<compile_context>
chip_gen: v6e
topology: v6e:2x2x1
jax: 0.10.0
libtpu: 0.0.40
codegen_flags: <defaults>
</compile_context>

<pallas_src>
import jax
import jax.numpy as jnp
from jax.experimental import pallas as pl
from jax.experimental.pallas import tpu as pltpu

EPS = 1e-5
C_IN = 256        # input channels
HW = 64           # 8 * 8 board squares
C_HEADS = 8       # 4 value + 2 policy + 2 zero-pad channels (sublane friendly)
P_OUT = 1968      # real policy width
P_PAD = 2048      # lane-dense padded policy width


# ---------------------------------------------------------------------------
# Kernel.  grid = (phase, sample):
#   phase 0: y = wc @ x_n   and accumulate BN sum / sum-of-squares (scratch)
#   phase 1: recompute y, normalize with batch stats, run value + policy heads
# ---------------------------------------------------------------------------
def _out_block_kernel(x_ref, wc_ref, g_ref, beta_ref,
                      w1_ref, b1_ref, w2_ref, b2_ref,
                      wf_ref, bf_ref,
                      p_ref, v_ref,
                      bn_sum, bn_sq):
    f32 = jnp.float32
    phase = pl.program_id(0)
    n = pl.program_id(1)
    n_pixels = pl.num_programs(1) * HW

    # fused 1x1 convs for both heads, channels-on-sublane:
    #   (8, 256) @ (256, 64) -> (8, 64)   [4 value | 2 policy | 2 pad channels]
    x = x_ref[0].astype(jnp.bfloat16)                                    # (256, 64)
    y = jnp.dot(wc_ref[...], x, preferred_element_type=f32)             # (8, 64)

    # ------------------ phase 0: batch-statistic accumulation ----------------
    @pl.when(phase == 0)
    def _accumulate_stats():
        @pl.when(n == 0)
        def _init():
            bn_sum[...] = jnp.zeros_like(bn_sum)
            bn_sq[...] = jnp.zeros_like(bn_sq)
        bn_sum[...] += y
        bn_sq[...] += y * y

    # ------------------ phase 1: normalize + both heads ----------------------
    @pl.when(phase == 1)
    def _compute():
        inv_r = 1.0 / n_pixels
        mean = jnp.sum(bn_sum[...], axis=1, keepdims=True) * inv_r       # (8, 1)
        ex2 = jnp.sum(bn_sq[...], axis=1, keepdims=True) * inv_r
        # TODO(synk): switch to a mean-shifted variance if channel means ever
        # become large relative to std (cancellation); not an issue post-conv here.
        var = ex2 - mean * mean
        scale = g_ref[...] * jax.lax.rsqrt(var + EPS)                     # (8, 1)
        shift = beta_ref[...] - mean * scale
        a = jnp.maximum(y * scale + shift, 0.0)                           # (8, 64)

        # value head: fc1 via 4 per-channel slab matmuls (PyTorch c*64+hw flatten
        # order absorbed by the row blocking of w1), relu, fc2 as a VPU dot, tanh.
        h = b1_ref[...]                                                    # (1, 256)
        for c in range(4):
            h = h + jnp.dot(a[c:c + 1, :].astype(jnp.bfloat16),
                            w1_ref[c * HW:(c + 1) * HW, :],
                            preferred_element_type=f32)
        h = jnp.maximum(h, 0.0)
        vv = jnp.sum(h * w2_ref[...], axis=1, keepdims=True) + b2_ref[...]
        v_ref[0] = jnp.tanh(vv)                                            # (1, 1)

        # policy head: fc via 2 per-channel slab matmuls; exp(logsoftmax)==softmax.
        logits = bf_ref[...]                                               # (1, 2048)
        for c in range(2):
            logits = logits + jnp.dot(a[4 + c:5 + c, :].astype(jnp.bfloat16),
                                      wf_ref[c * HW:(c + 1) * HW, :],
                                      preferred_element_type=f32)
        m = jnp.max(logits, axis=1, keepdims=True)
        e = jnp.exp(logits - m)
        p_ref[0] = e / jnp.sum(e, axis=1, keepdims=True)                   # exact softmax


# ---------------------------------------------------------------------------
# Jitted per-call wrapper: free reshape + one pallas_call + final slice only.
# ---------------------------------------------------------------------------
def out_block_forward(s, prep):
    N = s.shape[0]
    assert s.shape[1:] == (C_IN, 8, 8), "OutBlock expects (N, 256, 8, 8) input"
    x = s.reshape(N, C_IN, HW)    # row-major merge of (8, 8) -> 64: metadata only

    flops = N * (2 * 2 * C_HEADS * C_IN * HW      # conv (both phases)
                 + 2 * 4 * HW * 256               # fc1
                 + 2 * 2 * HW * P_PAD             # fc
                 + 2 * 256)                       # fc2
    transcendentals = N * (P_PAD + C_HEADS + 1)   # exp + rsqrt + tanh
    bytes_accessed = (2 * N * C_IN * HW * 4                               # x, per phase
                      + 2 * (C_HEADS * C_IN + 4 * HW * 256 + 2 * HW * P_PAD)  # bf16 weights
                      + 4 * (2 * C_HEADS + 2 * 256 + 2 + P_PAD)           # f32 vectors
                      + N * (P_PAD + 1) * 4)                              # outputs

    p_pad, v = pl.pallas_call(
        _out_block_kernel,
        out_shape=(jax.ShapeDtypeStruct((N, 1, P_PAD), jnp.float32),
                   jax.ShapeDtypeStruct((N, 1, 1), jnp.float32)),
        grid=(2, N),
        in_specs=[
            pl.BlockSpec((1, C_IN, HW), lambda ph, n: (n, 0, 0)),     # x (native NCHW)
            pl.BlockSpec((C_HEADS, C_IN), lambda ph, n: (0, 0)),      # fused conv weight
            pl.BlockSpec((C_HEADS, 1), lambda ph, n: (0, 0)),         # gamma
            pl.BlockSpec((C_HEADS, 1), lambda ph, n: (0, 0)),         # beta
            pl.BlockSpec((4 * HW, 256), lambda ph, n: (0, 0)),        # fc1^T
            pl.BlockSpec((1, 256), lambda ph, n: (0, 0)),             # fc1 bias
            pl.BlockSpec((1, 256), lambda ph, n: (0, 0)),             # fc2 weight row
            pl.BlockSpec((1, 1), lambda ph, n: (0, 0)),               # fc2 bias
            pl.BlockSpec((2 * HW, P_PAD), lambda ph, n: (0, 0)),      # fc^T (padded)
            pl.BlockSpec((1, P_PAD), lambda ph, n: (0, 0)),           # fc bias (pad=-1e30)
        ],
        # phase 0 parks both outputs on block 0 (no writeback while unwritten);
        # phase 1 writes the real per-sample blocks.
        out_specs=(pl.BlockSpec((1, 1, P_PAD), lambda ph, n: (ph * n, 0, 0)),
                   pl.BlockSpec((1, 1, 1), lambda ph, n: (ph * n, 0, 0))),
        scratch_shapes=[pltpu.VMEM((C_HEADS, HW), jnp.float32),   # BN sum
                        pltpu.VMEM((C_HEADS, HW), jnp.float32)],  # BN sum of squares
        compiler_params=pltpu.CompilerParams(
            dimension_semantics=("arbitrary", "arbitrary"),
            vmem_limit_bytes=8 * 1024 * 1024),
        cost_estimate=pl.CostEstimate(flops=flops,
                                      transcendentals=transcendentals,
                                      bytes_accessed=bytes_accessed),
    )(x, prep["wc"], prep["gamma"], prep["beta"],
      prep["w1"], prep["b1"], prep["w2"], prep["b2"],
      prep["wf"], prep["bf"])

    # TODO(synk): consumers that tolerate the padded (N, 2048) buffer should take
    # p_pad directly and skip this (N, 1968) copy.
    return p_pad.reshape(N, P_PAD)[:, :P_OUT], v.reshape(N, 1)


# ---------------------------------------------------------------------------
# One-time parameter preparation (NOT in the jitted per-call hot path).
# ---------------------------------------------------------------------------
def prepare_params(raw):
    # Conv biases are dropped: a per-channel additive constant is exactly
    # cancelled by batch-statistics BatchNorm.
    # TODO(synk): for eval-mode BN (running stats), fold conv bias + running
    # mean/var into gamma/beta here instead of using batch statistics.
    wc = jnp.concatenate([raw["conv_w"], raw["conv1_w"],
                          jnp.zeros((2, C_IN), jnp.float32)], axis=0)      # (8, 256)
    gamma = jnp.concatenate([raw["bn_g"], raw["bn1_g"],
                             jnp.ones((2,), jnp.float32)]).reshape(C_HEADS, 1)
    beta = jnp.concatenate([raw["bn_b"], raw["bn1_b"],
                            jnp.zeros((2,), jnp.float32)]).reshape(C_HEADS, 1)
    wf = jnp.concatenate([raw["fc_w"].T,
                          jnp.zeros((2 * HW, P_PAD - P_OUT), jnp.float32)], axis=1)
    bf = jnp.concatenate([raw["fc_b"].reshape(1, P_OUT),
                          jnp.full((1, P_PAD - P_OUT), -1e30, jnp.float32)], axis=1)
    return dict(
        wc=wc.astype(jnp.bfloat16),
        gamma=gamma, beta=beta,
        w1=raw["fc1_w"].T.astype(jnp.bfloat16),    # (256, 256): rows in c*64+hw order
        b1=raw["fc1_b"].reshape(1, 256),
        w2=raw["fc2_w"],                           # (1, 256)
        b2=raw["fc2_b"].reshape(1, 1),
        wf=wf.astype(jnp.bfloat16),                # (128, 2048)
        bf=bf,                                     # (1, 2048)
    )


def init_raw_params(key):
    """PyTorch-layout parameters with PyTorch-default-like uniform init."""
    ks = jax.random.split(key, 10)

    def u(k, shape, fan_in):
        bound = 1.0 / jnp.sqrt(float(fan_in))
        return jax.random.uniform(k, shape, jnp.float32, -bound, bound)

    return dict(
        conv_w=u(ks[0], (4, C_IN), C_IN), conv_b=u(ks[1], (4,), C_IN),
        bn_g=jnp.ones((4,), jnp.float32), bn_b=jnp.zeros((4,), jnp.float32),
        conv1_w=u(ks[2], (2, C_IN), C_IN), conv1_b=u(ks[3], (2,), C_IN),
        bn1_g=jnp.ones((2,), jnp.float32), bn1_b=jnp.zeros((2,), jnp.float32),
        fc1_w=u(ks[4], (256, 4 * HW), 4 * HW), fc1_b=u(ks[5], (256,), 4 * HW),
        fc2_w=u(ks[6], (1, 256), 256), fc2_b=u(ks[7], (1,), 256),
        fc_w=u(ks[8], (P_OUT, 2 * HW), 2 * HW), fc_b=u(ks[9], (P_OUT,), 2 * HW),
    )


# ---------------------------------------------------------------------------
# Pure-JAX f32 reference of the PyTorch forward (training-mode BN, with biases).
# ---------------------------------------------------------------------------
def reference_forward(s, raw):
    N = s.shape[0]

    def conv1x1(x, w, b):
        return jnp.einsum("nchw,oc->nohw", x, w) + b[None, :, None, None]

    def bn(y, g, b):
        mean = jnp.mean(y, axis=(0, 2, 3), keepdims=True)
        var = jnp.var(y, axis=(0, 2, 3), keepdims=True)      # biased, like PyTorch BN
        return ((y - mean) * jax.lax.rsqrt(var + EPS) * g[None, :, None, None]
                + b[None, :, None, None])

    v = jax.nn.relu(bn(conv1x1(s, raw["conv_w"], raw["conv_b"]),
                       raw["bn_g"], raw["bn_b"]))
    v = v.reshape(N, 4 * HW)
    v = jax.nn.relu(v @ raw["fc1_w"].T + raw["fc1_b"])
    v = jnp.tanh(v @ raw["fc2_w"].T + raw["fc2_b"])

    p = jax.nn.relu(bn(conv1x1(s, raw["conv1_w"], raw["conv1_b"]),
                       raw["bn1_g"], raw["bn1_b"]))
    p = p.reshape(N, 2 * HW)
    logits = p @ raw["fc_w"].T + raw["fc_b"]
    return jax.nn.softmax(logits, axis=1), v


if __name__ == "__main__":
    key = jax.random.PRNGKey(0)
    k_param, k_input = jax.random.split(key)

    raw = init_raw_params(k_param)
    prep = prepare_params(raw)                       # one-time weight relayout
    s = jax.random.normal(k_input, (4, C_IN, 8, 8), dtype=jnp.float32)   # NCHW

    fwd = jax.jit(out_block_forward)
    p_out, v_out = jax.block_until_ready(fwd(s, prep))

    assert p_out.shape == (4, P_OUT) and v_out.shape == (4, 1)
    assert bool(jnp.all(jnp.isfinite(p_out))) and bool(jnp.all(jnp.isfinite(v_out)))
    assert bool(jnp.allclose(jnp.sum(p_out, axis=1), 1.0, atol=1e-3))
    assert bool(jnp.all(p_out >= 0.0))
    assert bool(jnp.all(jnp.abs(v_out) <= 1.0 + 1e-6))

    p_ref, v_ref = reference_forward(s, raw)
    assert bool(jnp.allclose(p_out, p_ref, atol=2e-3))     # bf16 MXU tolerance
    assert bool(jnp.allclose(v_out, v_ref, atol=5e-2))

    print("KERNEL_OK")
</pallas_src>

<mosaic_0001>
module attributes {stable_mosaic.version = 11 : i64} {
  func.func @_out_block_kernel(%arg0: i32, %arg1: i32, %arg2: memref<1x256x64xf32, #tpu.memory_space<vmem>>, %arg3: memref<8x256xbf16, #tpu.memory_space<vmem>>, %arg4: memref<8x1xf32, #tpu.memory_space<vmem>>, %arg5: memref<8x1xf32, #tpu.memory_space<vmem>>, %arg6: memref<256x256xbf16, #tpu.memory_space<vmem>>, %arg7: memref<1x256xf32, #tpu.memory_space<vmem>>, %arg8: memref<1x256xf32, #tpu.memory_space<vmem>>, %arg9: memref<1x1xf32, #tpu.memory_space<vmem>>, %arg10: memref<128x2048xbf16, #tpu.memory_space<vmem>>, %arg11: memref<1x2048xf32, #tpu.memory_space<vmem>>, %arg12: memref<1x1x2048xf32, #tpu.memory_space<vmem>>, %arg13: memref<1x1x1xf32, #tpu.memory_space<vmem>>, %arg14: memref<8x64xf32, #tpu.memory_space<vmem>>, %arg15: memref<8x64xf32, #tpu.memory_space<vmem>>) attributes {dimension_semantics = [#tpu.dimension_semantics<arbitrary>, #tpu.dimension_semantics<arbitrary>], iteration_bounds = array<i64: 2, 4>, scalar_prefetch = 0 : i64, scratch_operands = 2 : i64, tpu.core_type = #tpu.core_type<tc>, window_params = [{transform_indices = @transform_0, window_bounds = array<i64: 1, 256, 64>}, {pipeline_mode = #tpu.pipeline_mode<synchronous>, transform_indices = @transform_1, window_bounds = array<i64: 8, 256>}, {pipeline_mode = #tpu.pipeline_mode<synchronous>, transform_indices = @transform_2, window_bounds = array<i64: 8, 1>}, {pipeline_mode = #tpu.pipeline_mode<synchronous>, transform_indices = @transform_3, window_bounds = array<i64: 8, 1>}, {pipeline_mode = #tpu.pipeline_mode<synchronous>, transform_indices = @transform_4, window_bounds = array<i64: 256, 256>}, {pipeline_mode = #tpu.pipeline_mode<synchronous>, transform_indices = @transform_5, window_bounds = array<i64: 1, 256>}, {pipeline_mode = #tpu.pipeline_mode<synchronous>, transform_indices = @transform_6, window_bounds = array<i64: 1, 256>}, {pipeline_mode = #tpu.pipeline_mode<synchronous>, transform_indices = @transform_7, window_bounds = array<i64: 1, 1>}, {pipeline_mode = #tpu.pipeline_mode<synchronous>, transform_indices = @transform_8, window_bounds = array<i64: 128, 2048>}, {pipeline_mode = #tpu.pipeline_mode<synchronous>, transform_indices = @transform_9, window_bounds = array<i64: 1, 2048>}, {transform_indices = @transform_10, window_bounds = array<i64: 1, 1, 2048>}, {transform_indices = @transform_11, window_bounds = array<i64: 1, 1, 1>}]} {
    %c0 = arith.constant 0 : index
    %c0_0 = arith.constant 0 : index
    %c0_1 = arith.constant 0 : index
    %0 = vector.load %arg2[%c0, %c0_0, %c0_1] : memref<1x256x64xf32, #tpu.memory_space<vmem>>, vector<1x256x64xf32>
    %1 = vector.shape_cast %0 : vector<1x256x64xf32> to vector<256x64xf32>
    %2 = arith.truncf %1 : vector<256x64xf32> to vector<256x64xbf16>
    %c0_2 = arith.constant 0 : index
    %c0_3 = arith.constant 0 : index
    %3 = vector.load %arg3[%c0_2, %c0_3] : memref<8x256xbf16, #tpu.memory_space<vmem>>, vector<8x256xbf16>
    %cst = arith.constant dense<0.000000e+00> : vector<8x64xf32>
    %4 = tpu.matmul %3, %2, %cst {dimension_numbers = #tpu.dot_dimension_numbers<[1], [0], [0], [1], [0, 0, 1, 1], [], []>} : vector<8x256xbf16>, vector<256x64xbf16>, vector<8x64xf32> -> vector<8x64xf32>
    %c0_i32 = arith.constant 0 : i32
    %5 = arith.cmpi eq, %arg0, %c0_i32 : i32
    %6 = arith.extui %5 : i1 to i32
    %c0_i32_4 = arith.constant 0 : i32
    %7 = arith.cmpi ne, %6, %c0_i32_4 : i32
    scf.if %7 {
      %c0_i32_6 = arith.constant 0 : i32
      %11 = arith.cmpi eq, %arg1, %c0_i32_6 : i32
      %12 = arith.extui %11 : i1 to i32
      %c0_i32_7 = arith.constant 0 : i32
      %13 = arith.cmpi ne, %12, %c0_i32_7 : i32
      scf.if %13 {
        %cst_16 = arith.constant 0.000000e+00 : f32
        %21 = vector.broadcast %cst_16 : f32 to vector<8x64xf32>
        %c0_17 = arith.constant 0 : index
        %c0_18 = arith.constant 0 : index
        %22 = vector.load %arg14[%c0_17, %c0_18] : memref<8x64xf32, #tpu.memory_space<vmem>>, vector<8x64xf32>
        tpu.vector_store %arg14[%c0_17, %c0_18], %21 {strides = array<i32>} : memref<8x64xf32, #tpu.memory_space<vmem>>, vector<8x64xf32>,
        %cst_19 = arith.constant 0.000000e+00 : f32
        %23 = vector.broadcast %cst_19 : f32 to vector<8x64xf32>
        %c0_20 = arith.constant 0 : index
        %c0_21 = arith.constant 0 : index
        %24 = vector.load %arg15[%c0_20, %c0_21] : memref<8x64xf32, #tpu.memory_space<vmem>>, vector<8x64xf32>
        tpu.vector_store %arg15[%c0_20, %c0_21], %23 {strides = array<i32>} : memref<8x64xf32, #tpu.memory_space<vmem>>, vector<8x64xf32>,
      } else {
      }
      %c0_8 = arith.constant 0 : index
      %c0_9 = arith.constant 0 : index
      %14 = vector.load %arg14[%c0_8, %c0_9] : memref<8x64xf32, #tpu.memory_space<vmem>>, vector<8x64xf32>
      %15 = arith.addf %14, %4 : vector<8x64xf32>
      %c0_10 = arith.constant 0 : index
      %c0_11 = arith.constant 0 : index
      %16 = vector.load %arg14[%c0_10, %c0_11] : memref<8x64xf32, #tpu.memory_space<vmem>>, vector<8x64xf32>
      tpu.vector_store %arg14[%c0_10, %c0_11], %15 {strides = array<i32>} : memref<8x64xf32, #tpu.memory_space<vmem>>, vector<8x64xf32>,
      %c0_12 = arith.constant 0 : index
      %c0_13 = arith.constant 0 : index
      %17 = vector.load %arg15[%c0_12, %c0_13] : memref<8x64xf32, #tpu.memory_space<vmem>>, vector<8x64xf32>
      %18 = arith.mulf %4, %4 : vector<8x64xf32>
      %19 = arith.addf %17, %18 : vector<8x64xf32>
      %c0_14 = arith.constant 0 : index
      %c0_15 = arith.constant 0 : index
      %20 = vector.load %arg15[%c0_14, %c0_15] : memref<8x64xf32, #tpu.memory_space<vmem>>, vector<8x64xf32>
      tpu.vector_store %arg15[%c0_14, %c0_15], %19 {strides = array<i32>} : memref<8x64xf32, #tpu.memory_space<vmem>>, vector<8x64xf32>,
    } else {
    }
    %c1_i32 = arith.constant 1 : i32
    %8 = arith.cmpi eq, %arg0, %c1_i32 : i32
    %9 = arith.extui %8 : i1 to i32
    %c0_i32_5 = arith.constant 0 : i32
    %10 = arith.cmpi ne, %9, %c0_i32_5 : i32
    scf.if %10 {
      %c0_6 = arith.constant 0 : index
      %c0_7 = arith.constant 0 : index
      %11 = vector.load %arg14[%c0_6, %c0_7] : memref<8x64xf32, #tpu.memory_space<vmem>>, vector<8x64xf32>
      %cst_8 = arith.constant dense<0.000000e+00> : vector<8xf32>
      %12 = vector.multi_reduction <add>, %11, %cst_8 [1] : vector<8x64xf32> to vector<8xf32>
      %13 = vector.shape_cast %12 : vector<8xf32> to vector<8x1xf32>
      %cst_9 = arith.constant 3.906250e-03 : f32
      %14 = vector.broadcast %cst_9 : f32 to vector<8x1xf32>
      %15 = arith.mulf %13, %14 : vector<8x1xf32>
      %c0_10 = arith.constant 0 : index
      %c0_11 = arith.constant 0 : index
      %16 = vector.load %arg15[%c0_10, %c0_11] : memref<8x64xf32, #tpu.memory_space<vmem>>, vector<8x64xf32>
      %cst_12 = arith.constant dense<0.000000e+00> : vector<8xf32>
      %17 = vector.multi_reduction <add>, %16, %cst_12 [1] : vector<8x64xf32> to vector<8xf32>
      %18 = vector.shape_cast %17 : vector<8xf32> to vector<8x1xf32>
      %cst_13 = arith.constant 3.906250e-03 : f32
      %19 = vector.broadcast %cst_13 : f32 to vector<8x1xf32>
      %20 = arith.mulf %18, %19 : vector<8x1xf32>
      %21 = arith.mulf %15, %15 : vector<8x1xf32>
      %22 = arith.subf %20, %21 : vector<8x1xf32>
      %c0_14 = arith.constant 0 : index
      %c0_15 = arith.constant 0 : index
      %23 = vector.load %arg4[%c0_14, %c0_15] : memref<8x1xf32, #tpu.memory_space<vmem>>, vector<8x1xf32>
      %cst_16 = arith.constant 9.99999974E-6 : f32
      %24 = vector.broadcast %cst_16 : f32 to vector<8x1xf32>
      %25 = arith.addf %22, %24 : vector<8x1xf32>
      %26 = math.rsqrt %25 : vector<8x1xf32>
      %27 = arith.mulf %23, %26 : vector<8x1xf32>
      %c0_17 = arith.constant 0 : index
      %c0_18 = arith.constant 0 : index
      %28 = vector.load %arg5[%c0_17, %c0_18] : memref<8x1xf32, #tpu.memory_space<vmem>>, vector<8x1xf32>
      %29 = arith.mulf %15, %27 : vector<8x1xf32>
      %30 = arith.subf %28, %29 : vector<8x1xf32>
      %31 = vector.broadcast %27 : vector<8x1xf32> to vector<8x64xf32>
      %32 = arith.mulf %4, %31 : vector<8x64xf32>
      %33 = vector.broadcast %30 : vector<8x1xf32> to vector<8x64xf32>
      %34 = arith.addf %32, %33 : vector<8x64xf32>
      %cst_19 = arith.constant 0.000000e+00 : f32
      %35 = vector.broadcast %cst_19 : f32 to vector<8x64xf32>
      %36 = arith.maximumf %34, %35 : vector<8x64xf32>
      %c0_20 = arith.constant 0 : index
      %c0_21 = arith.constant 0 : index
      %37 = vector.load %arg7[%c0_20, %c0_21] : memref<1x256xf32, #tpu.memory_space<vmem>>, vector<1x256xf32>
      %38 = vector.extract_strided_slice %36 {offsets = [0, 0], sizes = [1, 64], strides = [1, 1]} : vector<8x64xf32> to vector<1x64xf32>
      %39 = arith.truncf %38 : vector<1x64xf32> to vector<1x64xbf16>
      %c0_22 = arith.constant 0 : index
      %c0_23 = arith.constant 0 : index
      %40 = vector.load %arg6[%c0_22, %c0_23] : memref<256x256xbf16, #tpu.memory_space<vmem>>, vector<64x256xbf16>
      %cst_24 = arith.constant dense<0.000000e+00> : vector<1x256xf32>
      %41 = tpu.matmul %39, %40, %cst_24 {dimension_numbers = #tpu.dot_dimension_numbers<[1], [0], [0], [1], [0, 0, 1, 1], [], []>} : vector<1x64xbf16>, vector<64x256xbf16>, vector<1x256xf32> -> vector<1x256xf32>
      %42 = arith.addf %37, %41 : vector<1x256xf32>
      %43 = vector.extract_strided_slice %36 {offsets = [1, 0], sizes = [1, 64], strides = [1, 1]} : vector<8x64xf32> to vector<1x64xf32>
      %44 = arith.truncf %43 : vector<1x64xf32> to vector<1x64xbf16>
      %c64 = arith.constant 64 : index
      %c0_25 = arith.constant 0 : index
      %45 = vector.load %arg6[%c64, %c0_25] : memref<256x256xbf16, #tpu.memory_space<vmem>>, vector<64x256xbf16>
      %cst_26 = arith.constant dense<0.000000e+00> : vector<1x256xf32>
      %46 = tpu.matmul %44, %45, %cst_26 {dimension_numbers = #tpu.dot_dimension_numbers<[1], [0], [0], [1], [0, 0, 1, 1], [], []>} : vector<1x64xbf16>, vector<64x256xbf16>, vector<1x256xf32> -> vector<1x256xf32>
      %47 = arith.addf %42, %46 : vector<1x256xf32>
      %48 = vector.extract_strided_slice %36 {offsets = [2, 0], sizes = [1, 64], strides = [1, 1]} : vector<8x64xf32> to vector<1x64xf32>
      %49 = arith.truncf %48 : vector<1x64xf32> to vector<1x64xbf16>
      %c128 = arith.constant 128 : index
      %c0_27 = arith.constant 0 : index
      %50 = vector.load %arg6[%c128, %c0_27] : memref<256x256xbf16, #tpu.memory_space<vmem>>, vector<64x256xbf16>
      %cst_28 = arith.constant dense<0.000000e+00> : vector<1x256xf32>
      %51 = tpu.matmul %49, %50, %cst_28 {dimension_numbers = #tpu.dot_dimension_numbers<[1], [0], [0], [1], [0, 0, 1, 1], [], []>} : vector<1x64xbf16>, vector<64x256xbf16>, vector<1x256xf32> -> vector<1x256xf32>
      %52 = arith.addf %47, %51 : vector<1x256xf32>
      %53 = vector.extract_strided_slice %36 {offsets = [3, 0], sizes = [1, 64], strides = [1, 1]} : vector<8x64xf32> to vector<1x64xf32>
      %54 = arith.truncf %53 : vector<1x64xf32> to vector<1x64xbf16>
      %c192 = arith.constant 192 : index
      %c0_29 = arith.constant 0 : index
      %55 = vector.load %arg6[%c192, %c0_29] : memref<256x256xbf16, #tpu.memory_space<vmem>>, vector<64x256xbf16>
      %cst_30 = arith.constant dense<0.000000e+00> : vector<1x256xf32>
      %56 = tpu.matmul %54, %55, %cst_30 {dimension_numbers = #tpu.dot_dimension_numbers<[1], [0], [0], [1], [0, 0, 1, 1], [], []>} : vector<1x64xbf16>, vector<64x256xbf16>, vector<1x256xf32> -> vector<1x256xf32>
      %57 = arith.addf %52, %56 : vector<1x256xf32>
      %cst_31 = arith.constant 0.000000e+00 : f32
      %58 = vector.broadcast %cst_31 : f32 to vector<1x256xf32>
      %59 = arith.maximumf %57, %58 : vector<1x256xf32>
      %c0_32 = arith.constant 0 : index
      %c0_33 = arith.constant 0 : index
      %60 = vector.load %arg8[%c0_32, %c0_33] : memref<1x256xf32, #tpu.memory_space<vmem>>, vector<1x256xf32>
      %61 = arith.mulf %59, %60 : vector<1x256xf32>
      %cst_34 = arith.constant dense<0.000000e+00> : vector<1xf32>
      %62 = vector.multi_reduction <add>, %61, %cst_34 [1] : vector<1x256xf32> to vector<1xf32>
      %63 = vector.shape_cast %62 : vector<1xf32> to vector<1x1xf32>
      %c0_35 = arith.constant 0 : index
      %c0_36 = arith.constant 0 : index
      %64 = vector.load %arg9[%c0_35, %c0_36] : memref<1x1xf32, #tpu.memory_space<vmem>>, vector<1x1xf32>
      %65 = arith.addf %63, %64 : vector<1x1xf32>
      %66 = math.tanh %65 : vector<1x1xf32>
      %c0_37 = arith.constant 0 : index
      %c0_38 = arith.constant 0 : index
      %c0_39 = arith.constant 0 : index
      %67 = vector.load %arg13[%c0_37, %c0_38, %c0_39] : memref<1x1x1xf32, #tpu.memory_space<vmem>>, vector<1x1x1xf32>
      %68 = vector.shape_cast %67 : vector<1x1x1xf32> to vector<1x1xf32>
      %69 = vector.shape_cast %66 : vector<1x1xf32> to vector<1x1x1xf32>
      tpu.vector_store %arg13[%c0_37, %c0_38, %c0_39], %69 {strides = array<i32>} : memref<1x1x1xf32, #tpu.memory_space<vmem>>, vector<1x1x1xf32>,
      %c0_40 = arith.constant 0 : index
      %c0_41 = arith.constant 0 : index
      %70 = vector.load %arg11[%c0_40, %c0_41] : memref<1x2048xf32, #tpu.memory_space<vmem>>, vector<1x2048xf32>
      %71 = vector.extract_strided_slice %36 {offsets = [4, 0], sizes = [1, 64], strides = [1, 1]} : vector<8x64xf32> to vector<1x64xf32>
      %72 = arith.truncf %71 : vector<1x64xf32> to vector<1x64xbf16>
      %c0_42 = arith.constant 0 : index
      %c0_43 = arith.constant 0 : index
      %73 = vector.load %arg10[%c0_42, %c0_43] : memref<128x2048xbf16, #tpu.memory_space<vmem>>, vector<64x2048xbf16>
      %cst_44 = arith.constant dense<0.000000e+00> : vector<1x2048xf32>
      %74 = tpu.matmul %72, %73, %cst_44 {dimension_numbers = #tpu.dot_dimension_numbers<[1], [0], [0], [1], [0, 0, 1, 1], [], []>} : vector<1x64xbf16>, vector<64x2048xbf16>, vector<1x2048xf32> -> vector<1x2048xf32>
      %75 = arith.addf %70, %74 : vector<1x2048xf32>
      %76 = vector.extract_strided_slice %36 {offsets = [5, 0], sizes = [1, 64], strides = [1, 1]} : vector<8x64xf32> to vector<1x64xf32>
      %77 = arith.truncf %76 : vector<1x64xf32> to vector<1x64xbf16>
      %c64_45 = arith.constant 64 : index
      %c0_46 = arith.constant 0 : index
      %78 = vector.load %arg10[%c64_45, %c0_46] : memref<128x2048xbf16, #tpu.memory_space<vmem>>, vector<64x2048xbf16>
      %cst_47 = arith.constant dense<0.000000e+00> : vector<1x2048xf32>
      %79 = tpu.matmul %77, %78, %cst_47 {dimension_numbers = #tpu.dot_dimension_numbers<[1], [0], [0], [1], [0, 0, 1, 1], [], []>} : vector<1x64xbf16>, vector<64x2048xbf16>, vector<1x2048xf32> -> vector<1x2048xf32>
      %80 = arith.addf %75, %79 : vector<1x2048xf32>
      %cst_48 = arith.constant dense<0xFF800000> : vector<1xf32>
      %81 = vector.multi_reduction <maximumf>, %80, %cst_48 [1] : vector<1x2048xf32> to vector<1xf32>
      %82 = vector.shape_cast %81 : vector<1xf32> to vector<1x1xf32>
      %83 = vector.broadcast %82 : vector<1x1xf32> to vector<1x2048xf32>
      %84 = arith.subf %80, %83 : vector<1x2048xf32>
      %85 = math.exp %84 : vector<1x2048xf32>
      %cst_49 = arith.constant dense<0.000000e+00> : vector<1xf32>
      %86 = vector.multi_reduction <add>, %85, %cst_49 [1] : vector<1x2048xf32> to vector<1xf32>
      %87 = vector.shape_cast %86 : vector<1xf32> to vector<1x1xf32>
      %88 = vector.broadcast %87 : vector<1x1xf32> to vector<1x2048xf32>
      %89 = arith.divf %85, %88 : vector<1x2048xf32>
      %c0_50 = arith.constant 0 : index
      %c0_51 = arith.constant 0 : index
      %c0_52 = arith.constant 0 : index
      %90 = vector.load %arg12[%c0_50, %c0_51, %c0_52] : memref<1x1x2048xf32, #tpu.memory_space<vmem>>, vector<1x1x2048xf32>
      %91 = vector.shape_cast %90 : vector<1x1x2048xf32> to vector<1x2048xf32>
      %92 = vector.shape_cast %89 : vector<1x2048xf32> to vector<1x1x2048xf32>
      tpu.vector_store %arg12[%c0_50, %c0_51, %c0_52], %92 {strides = array<i32>} : memref<1x1x2048xf32, #tpu.memory_space<vmem>>, vector<1x1x2048xf32>,
    } else {
    }
    return
  }
  func.func @transform_0(%arg0: i32, %arg1: i32) -> (i32, i32, i32) {
    %c0_i32 = arith.constant 0 : i32
    %c0_i32_0 = arith.constant 0 : i32
    %c0_i32_1 = arith.constant 0 : i32
    return %arg1, %c0_i32, %c0_i32_0 : i32, i32, i32
  }
  func.func @transform_1(%arg0: i32, %arg1: i32) -> (i32, i32) {
    %c0_i32 = arith.constant 0 : i32
    %c0_i32_0 = arith.constant 0 : i32
    %c0_i32_1 = arith.constant 0 : i32
    return %c0_i32, %c0_i32_0 : i32, i32
  }
  func.func @transform_2(%arg0: i32, %arg1: i32) -> (i32, i32) {
    %c0_i32 = arith.constant 0 : i32
    %c0_i32_0 = arith.constant 0 : i32
    %c0_i32_1 = arith.constant 0 : i32
    return %c0_i32, %c0_i32_0 : i32, i32
  }
  func.func @transform_3(%arg0: i32, %arg1: i32) -> (i32, i32) {
    %c0_i32 = arith.constant 0 : i32
    %c0_i32_0 = arith.constant 0 : i32
    %c0_i32_1 = arith.constant 0 : i32
    return %c0_i32, %c0_i32_0 : i32, i32
  }
  func.func @transform_4(%arg0: i32, %arg1: i32) -> (i32, i32) {
    %c0_i32 = arith.constant 0 : i32
    %c0_i32_0 = arith.constant 0 : i32
    %c0_i32_1 = arith.constant 0 : i32
    return %c0_i32, %c0_i32_0 : i32, i32
  }
  func.func @transform_5(%arg0: i32, %arg1: i32) -> (i32, i32) {
    %c0_i32 = arith.constant 0 : i32
    %c0_i32_0 = arith.constant 0 : i32
    %c0_i32_1 = arith.constant 0 : i32
    return %c0_i32, %c0_i32_0 : i32, i32
  }
  func.func @transform_6(%arg0: i32, %arg1: i32) -> (i32, i32) {
    %c0_i32 = arith.constant 0 : i32
    %c0_i32_0 = arith.constant 0 : i32
    %c0_i32_1 = arith.constant 0 : i32
    return %c0_i32, %c0_i32_0 : i32, i32
  }
  func.func @transform_7(%arg0: i32, %arg1: i32) -> (i32, i32) {
    %c0_i32 = arith.constant 0 : i32
    %c0_i32_0 = arith.constant 0 : i32
    %c0_i32_1 = arith.constant 0 : i32
    return %c0_i32, %c0_i32_0 : i32, i32
  }
  func.func @transform_8(%arg0: i32, %arg1: i32) -> (i32, i32) {
    %c0_i32 = arith.constant 0 : i32
    %c0_i32_0 = arith.constant 0 : i32
    %c0_i32_1 = arith.constant 0 : i32
    return %c0_i32, %c0_i32_0 : i32, i32
  }
  func.func @transform_9(%arg0: i32, %arg1: i32) -> (i32, i32) {
    %c0_i32 = arith.constant 0 : i32
    %c0_i32_0 = arith.constant 0 : i32
    %c0_i32_1 = arith.constant 0 : i32
    return %c0_i32, %c0_i32_0 : i32, i32
  }
  func.func @transform_10(%arg0: i32, %arg1: i32) -> (i32, i32, i32) {
    %0 = arith.muli %arg0, %arg1 : i32
    %c0_i32 = arith.constant 0 : i32
    %c0_i32_0 = arith.constant 0 : i32
    %c0_i32_1 = arith.constant 0 : i32
    return %0, %c0_i32, %c0_i32_0 : i32, i32, i32
  }
  func.func @transform_11(%arg0: i32, %arg1: i32) -> (i32, i32, i32) {
    %0 = arith.muli %arg0, %arg1 : i32
    %c0_i32 = arith.constant 0 : i32
    %c0_i32_0 = arith.constant 0 : i32
    %c0_i32_1 = arith.constant 0 : i32
    return %0, %c0_i32, %c0_i32_0 : i32, i32, i32
  }
}

</mosaic_0001>

<bundles_post_ra>
// kernel: out_block_forward.1
= control target key start
LH: loop header
LB: loop body
LE: loop exit
PB: predicated region body
PF: predicated region fallthrough
CT: control target
= control target key end

     0   :  { %s3495_s19 = smov 0   ;;  %s3497_s20 = smov 0   ;;  %s4358_s0 = inlined_call_operand.vmem [shape: f32[4,256,64], index: 0, kind: input, shape index: {}]   ;;  %s4359_s1 = inlined_call_operand.vmem [shape: bf16[8,256], index: 1, kind: input, shape index: {}]   ;;  %s4360_s2 = inlined_call_operand.vmem [shape: f32[8,1], index: 2, kind: input, shape index: {}]   ;;  %s4361_s3 = inlined_call_operand.vmem [shape: f32[8,1], index: 3, kind: input, shape index: {}]   ;;  %s4362_s4 = inlined_call_operand.vmem [shape: bf16[256,256], index: 4, kind: input, shape index: {}]   ;;  %s4363_s5 = inlined_call_operand.vmem [shape: f32[1,256], index: 5, kind: input, shape index: {}]   ;;  %s4364_s6 = inlined_call_operand.vmem [shape: f32[1,256], index: 6, kind: input, shape index: {}]   ;;  %s4365_s7 = inlined_call_operand.<no memory space> [shape: f32[1,1], index: 7, kind: input, shape index: {}]   ;;  %s4366_s8 = inlined_call_operand.vmem [shape: bf16[128,2048], index: 8, kind: input, shape index: {}]   ;;  %s4367_s9 = inlined_call_operand.vmem [shape: f32[1,2048], index: 9, kind: input, shape index: {}]   ;;  %s4368_s10 = inlined_call_operand.vmem [shape: f32[4,1,2048], index: 10, kind: output, shape index: {0}]   ;;  %s4369_s11 = inlined_call_operand.vmem [shape: f32[4,1,1], index: 11, kind: output, shape index: {1}]  }
   0x1   :  { %v17_v0 = vstv %s4365_s7  ;;  %s3499_s21 = smov 0   ;;  %s3501_s22 = smov 0  }
   0x2   :  { %18 = vst [vmem:[#allocation4] sm:$0x1] %v17_v0  ;;  %s3503_s23 = smov 0  }
   0x3 LB: > { %s33_s7 = sadd.s32 1, %s3419_s21  ;;  %s36_s24 = sadd.s32 1, %s3423_s22  ;;  %s3427_s23 = sphi %s3503_s23, %s24_s23   ;;  %s3423_s22 = sphi %s3501_s22, %s4373_s22   ;;  %s3419_s21 = sphi %s3499_s21, %s4372_s21   ;;  %s3415_s20 = sphi %s3497_s20, %s4371_s20   ;;  %s3411_s19 = sphi %s3495_s19, %s4370_s19  }
   0x4   : > { %p34_p0 = scmp.ge.s32.totalorder %s33_s7, 4  ;;  %p3070_p1 = scmp.ge.s32.totalorder %s3427_s23, 1 }
   0x5   : > { %p358_p2 = scmp.lt.s32.totalorder %s3427_s23, 9 }
   0x6   : > { %s4375_s7 = smov (%p34_p0, %s33_s7), 0  ;;  %s4377_s24 = smov (!%p34_p0, %s36_s24), %s3423_s22 }
   0x7   : > { %p359_p3 = pnand %p3070_p1, %p358_p2  ;;  %p38_p4 = scmp.ge.s32.totalorder %s4377_s24, 2 }
   0x8   : > { %p402_p5 = scmp.lt.s32.totalorder (!%p359_p3), %s3411_s19, 3  ;;  %s407_s25 = smul.u32 (!%p359_p3), %s3411_s19, %s3415_s20 }
   0x9   : > { %s4379_s24 = smov (%p38_p4, %s4377_s24), 0  ;;  %362 = sbr.rel (%p359_p3) target bundleno = 1288 (0x508), region = 60 }
   0xa   : > { %p408_p6 = scmp.lt.s32.totalorder (!%p359_p3), %s407_s25, 3  ;;  %p3076_p7 = scmp.ne.s32.totalorder (!%p359_p3), %s3415_s20, 0 }
   0xe   : > { %v3535_v1 = vld [vmem:[%s4359_s1] sm:$0xff]  ;;  %s403_s28 = scalar_select %p402_p5, %s3411_s19, 3 }
   0xf   : > { %v3075_v2 = vcombine.high %v3535_v1, %v3535_v1  ;;  %s4381_s25 = smov (!%p408_p6, %s407_s25), 3  ;;  %v3074_v51 = vcombine.low %v3535_v1, %v3535_v1  ;;  %p3077_p8 = scmp.ne.s32.totalorder (!%p3076_p7), %s3411_s19, 0 }
  0x10   : > { %s3261_s29 = sshll.u32 %s403_s28, 8  ;;  %s3073_s14 = sshll.u32 %s4381_s25, 4 }
  0x11   : > { %507 = vmatprep.mubr.bf16.mxu0 %v3075_v2  ;;  %s3543_s13 = scalar_lea.vmem %s4358_s0, %s3261_s29  ;;  %s416_s17 = scalar_lea.vmem %s4369_s11, %s4381_s25 }
  0x12   : > { %v449_v3 = vld [vmem:[%s3543_s13 + $0xf0] sm:$0xff]  ;;  %v450_v4 = vld [vmem:[%s3543_s13 + $0xf8] sm:$0xff]  ;;  %v447_v8 = vld [vmem:[%s3543_s13 + $0xe0] sm:$0xff]  ;;  %s3564_s27 = scalar_lea.vmem %s4368_s10, %s3073_s14 }
  0x13   : > { %v433_v5 = vld [vmem:[%s3543_s13 + $0x70] sm:$0xff]  ;;  %v466_v6 = vpack.c.bf16 %v450_v4, %v449_v3  ;;  %v434_v7 = vld [vmem:[%s3543_s13 + $0x78] sm:$0xff]  ;;  %v448_v9 = vld [vmem:[%s3543_s13 + $0xe8] sm:$0xff] }
  0x14   : > { %v458_v10 = vpack.c.bf16 %v434_v7, %v433_v5  ;;  %v465_v11 = vpack.c.bf16 %v448_v9, %v447_v8  ;;  %v431_v12 = vld [vmem:[%s3543_s13 + $0x60] sm:$0xff]  ;;  %v432_v13 = vld [vmem:[%s3543_s13 + $0x68] sm:$0xff]  ;;  %v445_v14 = vld [vmem:[%s3543_s13 + $0xd0] sm:$0xff] }
  0x15   : > { %3262 = vmatprep.subr.bf16.mxu0 %v466_v6  ;;  %v446_v15 = vld [vmem:[%s3543_s13 + $0xd8] sm:$0xff]  ;;  %v457_v16 = vpack.c.bf16 %v432_v13, %v431_v12  ;;  %v429_v18 = vld [vmem:[%s3543_s13 + $0x50] sm:$0xff]  ;;  %v443_v20 = vld [vmem:[%s3543_s13 + $0xc0] sm:$0xff] }
  0x16   : > { %3263 = vmatpush3.bf16.msra.mxu0 %v458_v10  ;;  %v464_v17 = vpack.c.bf16 %v446_v15, %v445_v14  ;;  %v430_v19 = vld [vmem:[%s3543_s13 + $0x58] sm:$0xff]  ;;  %v444_v21 = vld [vmem:[%s3543_s13 + $0xc8] sm:$0xff]  ;;  %v427_v24 = vld [vmem:[%s3543_s13 + $0x40] sm:$0xff] }
  0x17   : > { %3264 = vmatprep.subr.bf16.mxu0 %v465_v11  ;;  %v456_v22 = vpack.c.bf16 %v430_v19, %v429_v18  ;;  %v463_v23 = vpack.c.bf16 %v444_v21, %v443_v20  ;;  %v428_v25 = vld [vmem:[%s3543_s13 + $0x48] sm:$0xff]  ;;  %v441_v26 = vld [vmem:[%s3543_s13 + $0xb0] sm:$0xff]  ;;  %v442_v27 = vld [vmem:[%s3543_s13 + $0xb8] sm:$0xff] }
  0x18   : > { %v455_v28 = vpack.c.bf16 %v428_v25, %v427_v24  ;;  %v462_v29 = vpack.c.bf16 %v442_v27, %v441_v26  ;;  %v425_v30 = vld [vmem:[%s3543_s13 + $0x30] sm:$0xff]  ;;  %v426_v31 = vld [vmem:[%s3543_s13 + $0x38] sm:$0xff]  ;;  %v439_v32 = vld [vmem:[%s3543_s13 + $0xa0] sm:$0xff] }
  0x19   : > { %v440_v33 = vld [vmem:[%s3543_s13 + $0xa8] sm:$0xff]  ;;  %v454_v34 = vpack.c.bf16 %v426_v31, %v425_v30  ;;  %v423_v36 = vld [vmem:[%s3543_s13 + $0x20] sm:$0xff]  ;;  %v437_v38 = vld [vmem:[%s3543_s13 + $0x90] sm:$0xff] }
  0x1a   : > { %3265 = vmatpush3.bf16.msra.mxu0 %v457_v16  ;;  %v461_v35 = vpack.c.bf16 %v440_v33, %v439_v32  ;;  %v424_v37 = vld [vmem:[%s3543_s13 + $0x28] sm:$0xff]  ;;  %v438_v39 = vld [vmem:[%s3543_s13 + $0x98] sm:$0xff]  ;;  %v421_v42 = vld [vmem:[%s3543_s13 + $0x10] sm:$0xff] }
  0x1b   : > { %3266 = vmatprep.subr.bf16.mxu0 %v464_v17  ;;  %v453_v40 = vpack.c.bf16 %v424_v37, %v423_v36  ;;  %v460_v41 = vpack.c.bf16 %v438_v39, %v437_v38  ;;  %v422_v43 = vld [vmem:[%s3543_s13 + $0x18] sm:$0xff]  ;;  %v435_v44 = vld [vmem:[%s3543_s13 + $0x80] sm:$0xff]  ;;  %v436_v45 = vld [vmem:[%s3543_s13 + $0x88] sm:$0xff] }
  0x1c   : > { %v452_v46 = vpack.c.bf16 %v422_v43, %v421_v42  ;;  %v459_v47 = vpack.c.bf16 %v436_v45, %v435_v44  ;;  %v419_v48 = vld [vmem:[%s3543_s13] sm:$0xff]  ;;  %v420_v49 = vld [vmem:[%s3543_s13 + $0x8] sm:$0xff] }
  0x1d   : > { %v451_v50 = vpack.c.bf16 %v420_v49, %v419_v48 }
  0x1e   : > { %3267 = vmatpush3.bf16.msra.mxu0 %v456_v22 }
  0x1f   : > { %3268 = vmatprep.subr.bf16.mxu0 %v463_v23 }
  0x22   : > { %3269 = vmatpush3.bf16.msra.mxu0 %v455_v28 }
  0x23   : > { %3270 = vmatprep.subr.bf16.mxu0 %v462_v29 }
  0x26   : > { %3271 = vmatpush3.bf16.msra.mxu0 %v454_v34 }
  0x27   : > { %3272 = vmatprep.subr.bf16.mxu0 %v461_v35 }
  0x2a   : > { %3273 = vmatpush3.bf16.msra.mxu0 %v453_v40 }
  0x2b   : > { %3274 = vmatprep.subr.bf16.mxu0 %v460_v41 }
  0x2e   : > { %3275 = vmatpush3.bf16.msra.mxu0 %v452_v46 }
  0x2f   : > { %3276 = vmatprep.subr.bf16.mxu0 %v459_v47 }
  0x32   : > { %3277 = vmatpush3.bf16.msra.mxu0 %v451_v50 }
  0x35   : > { %508 = vmatmul.mubr.bf16.vlgmr.msra.gmra.mxu0 %v3074_v51 }
  0xf5   : > { %v3278_v52 = vpop.f32.mrf.mxu0 }
  0xf7   : > { %v3279_v53 = vpop.f32.mrf.mxu0  ;;  %518 = sbr.rel (%p3076_p7) target bundleno = 269 (0x10d), region = 64 }
  0xf8   : > { %v3591_v54 = vadd.f32 %v3279_v53, %v3278_v52 }
  0xf9   : > { %v3281_v55 = vpop.f32.mrf.mxu0 }
  0xfb   : > { %v3282_v56 = vpop.f32.mrf.mxu0 }
  0xfc   : > { %522 = sbr.rel (%p3077_p8) target bundleno = 259 (0x103), region = 68 }
 0x101   : > { %vm523_vm0 = vcmask 523264   ;;  %v3429_v57 = vmov 0.0  }
 0x102   : > { %524 = vst.msk [vmem:[#allocation2] sm:$0xff] %vm523_vm0, %v3429_v57  ;;  %525 = vst.msk [vmem:[#allocation3] sm:$0xff] %vm523_vm0, %v3429_v57 }
 0x103 PF: > { %vm528_vm1 = vcmask 523264   ;;  %v531_v60 = vmul.f32 %v3591_v54, %v3591_v54 }
 0x109   : > { %v526_v58 = vld [vmem:[#allocation2] sm:$0xff]  ;;  %v530_v59 = vld [vmem:[#allocation3] sm:$0xff] }
 0x10a   : > { %v527_v61 = vadd.f32 %v3591_v54, %v526_v58  ;;  %v532_v62 = vadd.f32 %v531_v60, %v530_v59 }
 0x10c   : > { %529 = vst.msk [vmem:[#allocation2] sm:$0xff] %vm528_vm1, %v527_v61  ;;  %533 = vst.msk [vmem:[#allocation3] sm:$0xff] %vm528_vm1, %v532_v62 }
 0x10d PF: > { %p3078_p9 = scmp.ne.s32.totalorder %s3415_s20, 1 }
 0x10f   : > { %537 = sbr.rel (%p3078_p9) target bundleno = 1288 (0x508), region = 72 }
 0x114   : > { %v538_v63 = vld [vmem:[#allocation2] sm:$0xff]  ;;  %vm539_vm2 = vcmask 523264   ;;  %v544_v0 = vld [vmem:[#allocation3] sm:$0xff]  ;;  %v3430_v3 = vmov 0   ;;  %v3331_v4 = vld [vmem:[%s4362_s4 + $0x34] ss:$8 sps:$4 sm:$0xff]  }
 0x115   : > { %v540_v1 = vsel %vm539_vm2, %v538_v63, 0.0  ;;  %v545_v2 = vsel %vm539_vm2, %v544_v0, 0.0  ;;  %3329 = vset.pattern.permute.xlu1 %v3430_v3  ;;  %656 = vmatprep.mubr.bf16.mxu0 %v3430_v3  ;;  %v3333_v5 = vld [vmem:[%s4362_s4 + $0x30] ss:$8 sps:$4 sm:$0xff]   ;;  %v3334_v6 = vld [vmem:[%s4362_s4 + $0x74] ss:$8 sps:$4 sm:$0xff]  }
 0x116   : > { %541 = vadd.xlane.f32.xlu0 %v540_v1  ;;  %769 = vmatprep.mubr.bf16.mxu1 %v3430_v3  ;;  %v3336_v7 = vld [vmem:[%s4362_s4 + $0x70] ss:$8 sps:$4 sm:$0xff]   ;;  %v3337_v8 = vld [vmem:[%s4362_s4 + $0x24] ss:$8 sps:$4 sm:$0xff]   ;;  %v3339_v10 = vld [vmem:[%s4362_s4 + $0x20] ss:$8 sps:$4 sm:$0xff]  }
 0x117   : > { %3330 = vset.pattern.permute.xlu0 %v3430_v3  ;;  %632 = vmatprep.subr.bf16.mxu0 %v3331_v4  ;;  %v3340_v9 = vld [vmem:[%s4362_s4 + $0x64] ss:$8 sps:$4 sm:$0xff]   ;;  %v3342_v18 = vld [vmem:[%s4362_s4 + $0x60] ss:$8 sps:$4 sm:$0xff]   ;;  %v3343_v20 = vld [vmem:[%s4362_s4 + $0x14] ss:$8 sps:$4 sm:$0xff]  }
 0x118   : > { %745 = vmatprep.subr.bf16.mxu1 %v3334_v6  ;;  %633 = vmatpush1.bf16.msra.mxu0 %v3333_v5  ;;  %v551_v19 = vld [vmem:[%s4360_s2] sm:$0xff]  ;;  %v3345_v21 = vld [vmem:[%s4362_s4 + $0x10] ss:$8 sps:$4 sm:$0xff]   ;;  %v3346_v22 = vld [vmem:[%s4362_s4 + $0x54] ss:$8 sps:$4 sm:$0xff]   ;;  %vm1036_vm3 = vcmask 1040384  }
 0x119   : > { %746 = vmatpush1.bf16.msra.mxu1 %v3336_v7  ;;  %634 = vmatprep.subr.bf16.mxu0 %v3337_v8  ;;  %v3348_v25 = vld [vmem:[%s4362_s4 + $0x50] ss:$8 sps:$4 sm:$0xff]   ;;  %v555_v26 = vld [vmem:[%s4361_s3] sm:$0xff]  ;;  %v3357_v33 = vld [vmem:[%s4362_s4 + $0xb4] ss:$8 sps:$4 sm:$0xff]   ;;  %vm1045_vm4 = vcmask 0  }
 0x11a   : > { %546 = vadd.xlane.f32.xlu0 %v545_v2  ;;  %747 = vmatprep.subr.bf16.mxu1 %v3340_v9  ;;  %v3349_v27 = vld [vmem:[%s4362_s4 + $0x4] ss:$8 sps:$4 sm:$0xff]   ;;  %v3351_v29 = vld [vmem:[%s4362_s4] ss:$8 sps:$4 sm:$0xff]   ;;  %v3360_v34 = vld [vmem:[%s4362_s4 + $0xf4] ss:$8 sps:$4 sm:$0xff]  }
 0x11b   : > { %v3352_v30 = vld [vmem:[%s4362_s4 + $0x44] ss:$8 sps:$4 sm:$0xff]   ;;  %v3354_v32 = vld [vmem:[%s4362_s4 + $0x40] ss:$8 sps:$4 sm:$0xff]   ;;  %v3355_v40 = vld [vmem:[%s4362_s4 + $0xb0] ss:$8 sps:$4 sm:$0xff]  }
 0x11c   : > { %635 = vmatpush1.bf16.msra.mxu0 %v3339_v10  ;;  %v3363_v42 = vld [vmem:[%s4362_s4 + $0xa4] ss:$8 sps:$4 sm:$0xff]   ;;  %v3358_v43 = vld [vmem:[%s4362_s4 + $0xf0] ss:$8 sps:$4 sm:$0xff]   ;;  %v3361_v46 = vld [vmem:[%s4362_s4 + $0xa0] ss:$8 sps:$4 sm:$0xff]  }
 0x11d   : > { %748 = vmatpush1.bf16.msra.mxu1 %v3342_v18  ;;  %636 = vmatprep.subr.bf16.mxu0 %v3343_v20  ;;  %v3366_v45 = vld [vmem:[%s4362_s4 + $0xe4] ss:$8 sps:$4 sm:$0xff]   ;;  %v3369_v47 = vld [vmem:[%s4362_s4 + $0x94] ss:$8 sps:$4 sm:$0xff]   ;;  %v3364_v48 = vld [vmem:[%s4362_s4 + $0xe0] ss:$8 sps:$4 sm:$0xff]  }
 0x11e   : > { %749 = vmatprep.subr.bf16.mxu1 %v3346_v22  ;;  %v3372_v49 = vld [vmem:[%s4362_s4 + $0xd4] ss:$8 sps:$4 sm:$0xff]   ;;  %v3367_v50 = vld [vmem:[%s4362_s4 + $0x90] ss:$8 sps:$4 sm:$0xff]   ;;  %v3375_v51 = vld [vmem:[%s4362_s4 + $0x84] ss:$8 sps:$4 sm:$0xff]  }
 0x11f   : > { %v3370_v52 = vld [vmem:[%s4362_s4 + $0xd0] ss:$8 sps:$4 sm:$0xff]   ;;  %v1097_v53 = vld [vmem:[%s4366_s8 + $0x180] sm:$0xff]  ;;  %v1098_v57 = vld [vmem:[%s4366_s8 + $0x188] sm:$0xff] }
 0x120   : > { %637 = vmatpush1.bf16.msra.mxu0 %v3345_v21  ;;  %v3378_v55 = vld [vmem:[%s4362_s4 + $0xc4] ss:$8 sps:$4 sm:$0xff]   ;;  %v3373_v56 = vld [vmem:[%s4362_s4 + $0x80] ss:$8 sps:$4 sm:$0xff]  }
 0x121   : > { %750 = vmatpush1.bf16.msra.mxu1 %v3348_v25  ;;  %638 = vmatprep.subr.bf16.mxu0 %v3349_v27  ;;  %v1106_v58 = vld [vmem:[%s4366_s8 + $0x1c8] sm:$0xff]  ;;  %v1081_v61 = vld [vmem:[%s4366_s8 + $0x100] sm:$0xff]  ;;  %v1107_v25 = vld [vmem:[%s4366_s8 + $0x1d0] sm:$0xff] }
 0x122   : > { %751 = vmatprep.subr.bf16.mxu1 %v3352_v30  ;;  %v3376_v60 = vld [vmem:[%s4362_s4 + $0xc0] ss:$8 sps:$4 sm:$0xff]   ;;  %v3166_v63 = vcombine.high %v1098_v57, %v1106_v58  ;;  %v3165_v6 = vcombine.low %v1098_v57, %v1106_v58 }
 0x123   : > { %v1089_v62 = vld [vmem:[%s4366_s8 + $0x140] sm:$0xff]  ;;  %v1082_v1 = vld [vmem:[%s4366_s8 + $0x108] sm:$0xff] }
 0x124   : > { %639 = vmatpush1.bf16.msra.mxu0 %v3351_v29  ;;  %v1090_v2 = vld [vmem:[%s4366_s8 + $0x148] sm:$0xff]  ;;  %v3148_v5 = vcombine.high %v1081_v61, %v1089_v62  ;;  %v1065_v7 = vld [vmem:[%s4366_s8 + $0x80] sm:$0xff]  ;;  %v1108_v29 = vld [vmem:[%s4366_s8 + $0x1d8] sm:$0xff] }
 0x125   : > { %752 = vmatpush1.bf16.msra.mxu1 %v3354_v32  ;;  %858 = vmatprep.subr.bf16.mxu0 %v3357_v33  ;;  %v1073_v8 = vld [vmem:[%s4366_s8 + $0xc0] sm:$0xff]  ;;  %v3150_v10 = vcombine.high %v1082_v1, %v1090_v2  ;;  %v1050_v20 = vld [vmem:[%s4366_s8 + $0x8] sm:$0xff]  ;;  %v1083_v32 = vld [vmem:[%s4366_s8 + $0x110] sm:$0xff] }
 0x126   : > { %970 = vmatprep.subr.bf16.mxu1 %v3360_v34  ;;  %v1058_v21 = vld [vmem:[%s4366_s8 + $0x48] sm:$0xff]  ;;  %v1091_v33 = vld [vmem:[%s4366_s8 + $0x150] sm:$0xff]  ;;  %v1101_v58 = vld [vmem:[%s4366_s8 + $0x1a0] sm:$0xff] }
 0x19f   : > { %v542_v11 = vpop.xlane.xlu0 %541 }
 0x1a0   : > { %v543_v12 = vmul.f32 0.00390625, %v542_v11  ;;  %v3147_v11 = vcombine.low %v1081_v61, %v1089_v62  ;;  %v1102_v62 = vld [vmem:[%s4366_s8 + $0x1a8] sm:$0xff] }
 0x1a2   : > { %v549_v14 = vmul.f32 %v543_v12, %v543_v12 }
 0x1a3   : > { %v547_v13 = vpop.xlane.xlu0 %546 }
 0x1a4   : > { %v548_v15 = vmul.f32 0.00390625, %v547_v13  ;;  %v1074_v13 = vld [vmem:[%s4366_s8 + $0xc8] sm:$0xff] }
 0x1a6   : > { %v550_v16 = vsub.f32 %v548_v15, %v549_v14  ;;  %v3132_v14 = vcombine.high %v1065_v7, %v1073_v8  ;;  %v3149_v15 = vcombine.low %v1082_v1, %v1090_v2  ;;  %v1085_v2 = vld [vmem:[%s4366_s8 + $0x120] sm:$0xff] }
 0x1a8   : > { %v552_v17 = vadd.f32 1e-05, %v550_v16  ;;  %v1049_v16 = vld [vmem:[%s4366_s8] sm:$0xff] }
 0x1aa   : > { %3379 = vrsqrt.f32 %v552_v17  ;;  %v1057_v17 = vld [vmem:[%s4366_s8 + $0x40] sm:$0xff] }
 0x1ab   : > { %v3116_v22 = vcombine.high %v1049_v16, %v1057_v17  ;;  %v3115_v27 = vcombine.low %v1049_v16, %v1057_v17  ;;  %v1078_v16 = vld [vmem:[%s4366_s8 + $0xe8] sm:$0xff] }
 0x1b7   : > { %v3380_v23 = vpop.eup %3379 }
 0x1b8   : > { %v554_v24 = vmul.f32 %v3380_v23, %v551_v19  ;;  %v3131_v19 = vcombine.low %v1065_v7, %v1073_v8  ;;  %v1086_v7 = vld [vmem:[%s4366_s8 + $0x128] sm:$0xff] }
 0x1b9   : > { %v1094_v8 = vld [vmem:[%s4366_s8 + $0x168] sm:$0xff] }
 0x1ba   : > { %560 = vperm.xlu1 %3329, %v554_v24   ;;  %v556_v28 = vmul.f32 %v554_v24, %v543_v12  ;;  %v1066_v12 = vld [vmem:[%s4366_s8 + $0x88] sm:$0xff]  ;;  %v1099_v24 = vld [vmem:[%s4366_s8 + $0x190] sm:$0xff] }
 0x1bb   : > { %v3134_v18 = vcombine.high %v1066_v12, %v1074_v13  ;;  %v3133_v23 = vcombine.low %v1066_v12, %v1074_v13  ;;  %v3168_v30 = vcombine.high %v1099_v24, %v1107_v25  ;;  %v1077_v12 = vld [vmem:[%s4366_s8 + $0xe0] sm:$0xff]  ;;  %v3158_v13 = vcombine.high %v1086_v7, %v1094_v8 }
 0x1bc   : > { %v557_v31 = vsub.f32 %v555_v26, %v556_v28  ;;  %v3118_v26 = vcombine.high %v1050_v20, %v1058_v21  ;;  %v1100_v28 = vld [vmem:[%s4366_s8 + $0x198] sm:$0xff] }
 0x1bd   : > { %v3170_v34 = vcombine.high %v1100_v28, %v1108_v29 }
 0x1be   : > { %566 = vperm.xlu1 %3329, %v557_v31   ;;  %v3117_v31 = vcombine.low %v1050_v20, %v1058_v21  ;;  %v1061_v20 = vld [vmem:[%s4366_s8 + $0x60] sm:$0xff] }
 0x235   : > { %v561_v35 = vpop.permute.xlu1 %560 }
 0x236   : > { %v563_v36 = vmul.f32 %v3591_v54, %v561_v35  ;;  %v1105_v54 = vld [vmem:[%s4366_s8 + $0x1c0] sm:$0xff]  ;;  %v3167_v35 = vcombine.low %v1099_v24, %v1107_v25  ;;  %v1062_v24 = vld [vmem:[%s4366_s8 + $0x68] sm:$0xff] }
 0x237   : > { %v3164_v59 = vcombine.high %v1097_v53, %v1105_v54  ;;  %v3163_v0 = vcombine.low %v1097_v53, %v1105_v54  ;;  %v1052_v54 = vld [vmem:[%s4366_s8 + $0x18] sm:$0xff] }
 0x239   : > { %v567_v37 = vpop.permute.xlu1 %566 }
 0x23a   : > { %v569_v38 = vadd.f32 %v567_v37, %v563_v36  ;;  %v1084_v36 = vld [vmem:[%s4366_s8 + $0x118] sm:$0xff] }
 0x23b   : > { %v1092_v37 = vld [vmem:[%s4366_s8 + $0x158] sm:$0xff] }
 0x23c   : > { %v570_v39 = vmax.f32 %v569_v38, 0.0 }
 0x23e   : > { %v3669_v41 = vpack.c.bf16 %v570_v39, %v570_v39  ;;  %v3152_v39 = vcombine.high %v1083_v32, %v1091_v33 }
 0x240   : > { %3087 = vmatmul.mubr.msk.bf16.vlgmr.msra.gmra.mxu0 %vm539_vm2, %v3669_v41  ;;  %v3680_v44 = vshrl.u32 %v3669_v41, 16  ;;  %v806_v4 = vrot.slane %v3669_v41, 1  ;;  %v3798_v38 = vrot.slane %v3669_v41, 2  ;;  %v3151_v41 = vcombine.low %v1083_v32, %v1091_v33  ;;  %v1112_v32 = vld [vmem:[%s4366_s8 + $0x1f8] sm:$0xff] }
 0x241   : > { %859 = vmatpush1.bf16.msra.mxu0 %v3355_v40  ;;  %882 = vmatprep.mubr.bf16.mxu0 %v3430_v3  ;;  %v3169_v40 = vcombine.low %v1100_v28, %v1108_v29  ;;  %v1111_v28 = vld [vmem:[%s4366_s8 + $0x1f0] sm:$0xff] }
 0x242   : > { %3096 = vmatmul.mubr.msk.bf16.vlgmr.msra.gmra.mxu1 %vm539_vm2, %v3680_v44  ;;  %860 = vmatprep.subr.bf16.mxu0 %v3363_v42  ;;  %v918_v9 = vrot.slane %v3680_v44, 1  ;;  %v1067_v42 = vld [vmem:[%s4366_s8 + $0x90] sm:$0xff] }
 0x243   : > { %971 = vmatpush1.bf16.msra.mxu1 %v3358_v43  ;;  %994 = vmatprep.mubr.bf16.mxu1 %v3430_v3  ;;  %v1075_v43 = vld [vmem:[%s4366_s8 + $0xd0] sm:$0xff] }
 0x244   : > { %972 = vmatprep.subr.bf16.mxu1 %v3366_v45  ;;  %v3154_v45 = vcombine.high %v1084_v36, %v1092_v37  ;;  %v3135_v53 = vcombine.low %v1067_v42, %v1075_v43 }
 0x245   : > { %861 = vmatpush1.bf16.msra.mxu0 %v3361_v46  ;;  %v1068_v46 = vld [vmem:[%s4366_s8 + $0x98] sm:$0xff] }
 0x246   : > { %862 = vmatprep.subr.bf16.mxu0 %v3369_v47  ;;  %v1076_v47 = vld [vmem:[%s4366_s8 + $0xd8] sm:$0xff] }
 0x247   : > { %973 = vmatpush1.bf16.msra.mxu1 %v3364_v48  ;;  %v3136_v48 = vcombine.high %v1067_v42, %v1075_v43  ;;  %v3137_v57 = vcombine.low %v1068_v46, %v1076_v47  ;;  %v1096_v42 = vld [vmem:[%s4366_s8 + $0x178] sm:$0xff] }
 0x248   : > { %974 = vmatprep.subr.bf16.mxu1 %v3372_v49  ;;  %v3153_v49 = vcombine.low %v1084_v36, %v1092_v37  ;;  %v1095_v36 = vld [vmem:[%s4366_s8 + $0x170] sm:$0xff] }
 0x249   : > { %863 = vmatpush1.bf16.msra.mxu0 %v3367_v50  ;;  %v1051_v50 = vld [vmem:[%s4366_s8 + $0x10] sm:$0xff] }
 0x24a   : > { %864 = vmatprep.subr.bf16.mxu0 %v3375_v51  ;;  %v1059_v51 = vld [vmem:[%s4366_s8 + $0x50] sm:$0xff] }
 0x24b   : > { %975 = vmatpush1.bf16.msra.mxu1 %v3370_v52  ;;  %v3138_v52 = vcombine.high %v1068_v46, %v1076_v47  ;;  %v3119_v61 = vcombine.low %v1051_v50, %v1059_v51  ;;  %v1079_v46 = vld [vmem:[%s4366_s8 + $0xf0] sm:$0xff] }
 0x24c   : > { %976 = vmatprep.subr.bf16.mxu1 %v3378_v55  ;;  %v1060_v55 = vld [vmem:[%s4366_s8 + $0x58] sm:$0xff] }
 0x24d   : > { %865 = vmatpush1.bf16.msra.mxu0 %v3373_v56  ;;  %v3120_v56 = vcombine.high %v1051_v50, %v1059_v51  ;;  %v3121_v1 = vcombine.low %v1052_v54, %v1060_v55  ;;  %v1080_v50 = vld [vmem:[%s4366_s8 + $0xf8] sm:$0xff] }
 0x24e   : > { %1445 = vmatprep.subr.bf16.mxu0 %v3164_v59  ;;  %v1109_v59 = vld [vmem:[%s4366_s8 + $0x1e0] sm:$0xff] }
 0x24f   : > { %977 = vmatpush1.bf16.msra.mxu1 %v3376_v60  ;;  %v3122_v60 = vcombine.high %v1052_v54, %v1060_v55  ;;  %v1063_v54 = vld [vmem:[%s4366_s8 + $0x70] sm:$0xff] }
 0x250   : > { %3105 = vmatmul.mubr.msk.bf16.vlgmr.msra.gmra.mxu0 %vm539_vm2, %v806_v4  ;;  %1486 = vmatprep.subr.bf16.mxu1 %v3166_v63  ;;  %v1110_v63 = vld [vmem:[%s4366_s8 + $0x1e8] sm:$0xff]  ;;  %v1093_v4 = vld [vmem:[%s4366_s8 + $0x160] sm:$0xff] }
 0x251   : > { %1446 = vmatpush1.bf16.msra.mxu0 %v3163_v0  ;;  %1469 = vmatprep.mubr.bf16.mxu0 %v3430_v3  ;;  %v3172_v0 = vcombine.high %v1101_v58, %v1109_v59 }
 0x252   : > { %3114 = vmatmul.mubr.msk.bf16.vlgmr.msra.gmra.mxu1 %vm539_vm2, %v918_v9  ;;  %1447 = vmatprep.subr.bf16.mxu0 %v3148_v5  ;;  %v3174_v5 = vcombine.high %v1102_v62, %v1110_v63  ;;  %v3156_v9 = vcombine.high %v1085_v2, %v1093_v4 }
 0x253   : > { %1487 = vmatpush1.bf16.msra.mxu1 %v3165_v6  ;;  %1510 = vmatprep.mubr.bf16.mxu1 %v3430_v3  ;;  %v3171_v6 = vcombine.low %v1101_v58, %v1109_v59  ;;  %v1064_v58 = vld [vmem:[%s4366_s8 + $0x78] sm:$0xff] }
 0x254   : > { %1488 = vmatprep.subr.bf16.mxu1 %v3150_v10  ;;  %v3173_v10 = vcombine.low %v1102_v62, %v1110_v63  ;;  %v1939_v62 = vld [vmem:[%s4366_s8 + $0x3c0] sm:$0xff] }
 0x255   : > { %1448 = vmatpush1.bf16.msra.mxu0 %v3147_v11  ;;  %v1069_v11 = vld [vmem:[%s4366_s8 + $0xa0] sm:$0xff] }
 0x256   : > { %1449 = vmatprep.subr.bf16.mxu0 %v3132_v14  ;;  %v3155_v14 = vcombine.low %v1085_v2, %v1093_v4  ;;  %v3140_v17 = vcombine.high %v1069_v11, %v1077_v12  ;;  %v1940_v2 = vld [vmem:[%s4366_s8 + $0x3c8] sm:$0xff] }
 0x257   : > { %1489 = vmatpush1.bf16.msra.mxu1 %v3149_v15  ;;  %v1070_v15 = vld [vmem:[%s4366_s8 + $0xa8] sm:$0xff] }
 0x258   : > { %1490 = vmatprep.subr.bf16.mxu1 %v3134_v18  ;;  %v3157_v18 = vcombine.low %v1086_v7, %v1094_v8  ;;  %v3142_v21 = vcombine.high %v1070_v15, %v1078_v16  ;;  %v1923_v7 = vld [vmem:[%s4366_s8 + $0x340] sm:$0xff] }
 0x259   : > { %1450 = vmatpush1.bf16.msra.mxu0 %v3131_v19  ;;  %v1053_v19 = vld [vmem:[%s4366_s8 + $0x20] sm:$0xff] }
 0x25a   : > { %1451 = vmatprep.subr.bf16.mxu0 %v3116_v22  ;;  %v3139_v22 = vcombine.low %v1069_v11, %v1077_v12  ;;  %v3124_v25 = vcombine.high %v1053_v19, %v1061_v20  ;;  %v1924_v11 = vld [vmem:[%s4366_s8 + $0x348] sm:$0xff] }
 0x25b   : > { %1491 = vmatpush1.bf16.msra.mxu1 %v3133_v23  ;;  %v1054_v23 = vld [vmem:[%s4366_s8 + $0x28] sm:$0xff] }
 0x25c   : > { %1492 = vmatprep.subr.bf16.mxu1 %v3118_v26  ;;  %v3141_v26 = vcombine.low %v1070_v15, %v1078_v16  ;;  %v3126_v29 = vcombine.high %v1054_v23, %v1062_v24  ;;  %v1907_v15 = vld [vmem:[%s4366_s8 + $0x2c0] sm:$0xff] }
 0x25d   : > { %1452 = vmatpush1.bf16.msra.mxu0 %v3115_v27  ;;  %v1103_v27 = vld [vmem:[%s4366_s8 + $0x1b0] sm:$0xff] }
 0x25e   : > { %1527 = vmatprep.subr.bf16.mxu0 %v3168_v30  ;;  %v3123_v30 = vcombine.low %v1053_v19, %v1061_v20  ;;  %v3176_v33 = vcombine.high %v1103_v27, %v1111_v28  ;;  %v1908_v19 = vld [vmem:[%s4366_s8 + $0x2c8] sm:$0xff] }
 0x25f   : > { %1493 = vmatpush1.bf16.msra.mxu1 %v3117_v31  ;;  %v1104_v31 = vld [vmem:[%s4366_s8 + $0x1b8] sm:$0xff] }
 0x260   : > { %3179 = vmatmul.mubr.msk.bf16.vlgmr.msra.gmra.mxu0 %vm539_vm2, %v3798_v38  ;;  %1568 = vmatprep.subr.bf16.mxu1 %v3170_v34  ;;  %v3125_v34 = vcombine.low %v1054_v23, %v1062_v24  ;;  %v3178_v37 = vcombine.high %v1104_v31, %v1112_v32  ;;  %v1891_v23 = vld [vmem:[%s4366_s8 + $0x240] sm:$0xff] }
 0x261   : > { %1528 = vmatpush1.bf16.msra.mxu0 %v3167_v35  ;;  %1551 = vmatprep.mubr.bf16.mxu0 %v3430_v3  ;;  %v1087_v35 = vld [vmem:[%s4366_s8 + $0x130] sm:$0xff] }
 0x262   : > { %3180 = vmatmul.mubr.msk.bf16.vlgmr.msra.gmra.mxu1 %vm539_vm2, %v3798_v38  ;;  %1529 = vmatprep.subr.bf16.mxu0 %v3152_v39  ;;  %v3175_v39 = vcombine.low %v1103_v27, %v1111_v28  ;;  %v3160_v43 = vcombine.high %v1087_v35, %v1095_v36 }
 0x263   : > { %1569 = vmatpush1.bf16.msra.mxu1 %v3169_v40  ;;  %1592 = vmatprep.mubr.bf16.mxu1 %v3430_v3  ;;  %v1088_v40 = vld [vmem:[%s4366_s8 + $0x138] sm:$0xff] }
 0x264   : > { %1570 = vmatprep.subr.bf16.mxu1 %v3154_v45  ;;  %v3177_v45 = vcombine.low %v1104_v31, %v1112_v32  ;;  %v3162_v47 = vcombine.high %v1088_v40, %v1096_v42 }
 0x265   : > { %1530 = vmatpush1.bf16.msra.mxu0 %v3151_v41  ;;  %v1071_v41 = vld [vmem:[%s4366_s8 + $0xb0] sm:$0xff] }
 0x266   : > { %1531 = vmatprep.subr.bf16.mxu0 %v3136_v48  ;;  %v3159_v48 = vcombine.low %v1087_v35, %v1095_v36  ;;  %v3144_v51 = vcombine.high %v1071_v41, %v1079_v46 }
 0x267   : > { %1571 = vmatpush1.bf16.msra.mxu1 %v3153_v49  ;;  %v1072_v49 = vld [vmem:[%s4366_s8 + $0xb8] sm:$0xff] }
 0x268   : > { %1572 = vmatprep.subr.bf16.mxu1 %v3138_v52  ;;  %v3161_v52 = vcombine.low %v1088_v40, %v1096_v42  ;;  %v3146_v55 = vcombine.high %v1072_v49, %v1080_v50 }
 0x269   : > { %1532 = vmatpush1.bf16.msra.mxu0 %v3135_v53  ;;  %v1055_v53 = vld [vmem:[%s4366_s8 + $0x30] sm:$0xff] }
 0x26a   : > { %1533 = vmatprep.subr.bf16.mxu0 %v3120_v56  ;;  %v3143_v56 = vcombine.low %v1071_v41, %v1079_v46  ;;  %v3128_v59 = vcombine.high %v1055_v53, %v1063_v54  ;;  %v4017_v41 = vrot.slane %v3680_v44, 2 }
 0x26b   : > { %1573 = vmatpush1.bf16.msra.mxu1 %v3137_v57  ;;  %v1056_v57 = vld [vmem:[%s4366_s8 + $0x38] sm:$0xff] }
 0x26c   : > { %1574 = vmatprep.subr.bf16.mxu1 %v3122_v60  ;;  %v3145_v60 = vcombine.low %v1072_v49, %v1080_v50  ;;  %v3130_v63 = vcombine.high %v1056_v57, %v1064_v58  ;;  %v1909_v49 = vld [vmem:[%s4366_s8 + $0x2d0] sm:$0xff] }
 0x26d   : > { %1534 = vmatpush1.bf16.msra.mxu0 %v3119_v61  ;;  %v1931_v61 = vld [vmem:[%s4366_s8 + $0x380] sm:$0xff] }
 0x26e   : > { %1609 = vmatprep.subr.bf16.mxu0 %v3172_v0  ;;  %v3127_v0 = vcombine.low %v1055_v53, %v1063_v54  ;;  %v3236_v4 = vcombine.high %v1931_v61, %v1939_v62 }
 0x26f   : > { %1575 = vmatpush1.bf16.msra.mxu1 %v3121_v1  ;;  %v1932_v1 = vld [vmem:[%s4366_s8 + $0x388] sm:$0xff] }
 0x270   : > { %3181 = vmatmul.mubr.msk.bf16.vlgmr.msra.gmra.mxu0 %vm539_vm2, %v3798_v38  ;;  %1650 = vmatprep.subr.bf16.mxu1 %v3174_v5  ;;  %v3129_v5 = vcombine.low %v1056_v57, %v1064_v58  ;;  %v3238_v8 = vcombine.high %v1932_v1, %v1940_v2 }
 0x271   : > { %1610 = vmatpush1.bf16.msra.mxu0 %v3171_v6  ;;  %1633 = vmatprep.mubr.bf16.mxu0 %v3430_v3  ;;  %v1915_v6 = vld [vmem:[%s4366_s8 + $0x300] sm:$0xff] }
 0x272   : > { %3182 = vmatmul.mubr.msk.bf16.vlgmr.msra.gmra.mxu1 %vm539_vm2, %v3798_v38  ;;  %1611 = vmatprep.subr.bf16.mxu0 %v3156_v9  ;;  %v3235_v9 = vcombine.low %v1931_v61, %v1939_v62  ;;  %v3220_v12 = vcombine.high %v1915_v6, %v1923_v7 }
 0x273   : > { %1651 = vmatpush1.bf16.msra.mxu1 %v3173_v10  ;;  %1674 = vmatprep.mubr.bf16.mxu1 %v3430_v3  ;;  %v1916_v10 = vld [vmem:[%s4366_s8 + $0x308] sm:$0xff] }
 0x274   : > { %1652 = vmatprep.subr.bf16.mxu1 %v3158_v13  ;;  %v3237_v13 = vcombine.low %v1932_v1, %v1940_v2  ;;  %v3222_v16 = vcombine.high %v1916_v10, %v1924_v11 }
 0x275   : > { %1612 = vmatpush1.bf16.msra.mxu0 %v3155_v14  ;;  %v1899_v14 = vld [vmem:[%s4366_s8 + $0x280] sm:$0xff] }
 0x276   : > { %1613 = vmatprep.subr.bf16.mxu0 %v3140_v17  ;;  %v3219_v17 = vcombine.low %v1915_v6, %v1923_v7  ;;  %v3204_v20 = vcombine.high %v1899_v14, %v1907_v15 }
 0x277   : > { %1653 = vmatpush1.bf16.msra.mxu1 %v3157_v18  ;;  %v1900_v18 = vld [vmem:[%s4366_s8 + $0x288] sm:$0xff] }
 0x278   : > { %1654 = vmatprep.subr.bf16.mxu1 %v3142_v21  ;;  %v3221_v21 = vcombine.low %v1916_v10, %v1924_v11  ;;  %v3206_v24 = vcombine.high %v1900_v18, %v1908_v19  ;;  %v3205_v28 = vcombine.low %v1900_v18, %v1908_v19 }
 0x279   : > { %1614 = vmatpush1.bf16.msra.mxu0 %v3139_v22  ;;  %v1883_v22 = vld [vmem:[%s4366_s8 + $0x200] sm:$0xff] }
 0x27a   : > { %1615 = vmatprep.subr.bf16.mxu0 %v3124_v25  ;;  %v3203_v25 = vcombine.low %v1899_v14, %v1907_v15  ;;  %v3188_v27 = vcombine.high %v1883_v22, %v1891_v23  ;;  %v3187_v32 = vcombine.low %v1883_v22, %v1891_v23 }
 0x27b   : > { %1655 = vmatpush1.bf16.msra.mxu1 %v3141_v26  ;;  %v1892_v26 = vld [vmem:[%s4366_s8 + $0x248] sm:$0xff] }
 0x27c   : > { %1656 = vmatprep.subr.bf16.mxu1 %v3126_v29  ;;  %v1933_v29 = vld [vmem:[%s4366_s8 + $0x390] sm:$0xff] }
 0x27d   : > { %1616 = vmatpush1.bf16.msra.mxu0 %v3123_v30  ;;  %v1941_v30 = vld [vmem:[%s4366_s8 + $0x3d0] sm:$0xff] }
 0x27e   : > { %1691 = vmatprep.subr.bf16.mxu0 %v3176_v33  ;;  %v1934_v33 = vld [vmem:[%s4366_s8 + $0x398] sm:$0xff]  ;;  %v3240_v35 = vcombine.high %v1933_v29, %v1941_v30  ;;  %v3239_v42 = vcombine.low %v1933_v29, %v1941_v30 }
 0x27f   : > { %1657 = vmatpush1.bf16.msra.mxu1 %v3125_v34  ;;  %v1942_v34 = vld [vmem:[%s4366_s8 + $0x3d8] sm:$0xff] }
 0x280   : > { %3183 = vmatmul.mubr.msk.bf16.vlgmr.msra.gmra.mxu0 %vm539_vm2, %v3798_v38  ;;  %1732 = vmatprep.subr.bf16.mxu1 %v3178_v37  ;;  %v1917_v37 = vld [vmem:[%s4366_s8 + $0x310] sm:$0xff]  ;;  %v3242_v40 = vcombine.high %v1934_v33, %v1942_v34 }
 0x281   : > { %1692 = vmatpush1.bf16.msra.mxu0 %v3175_v39  ;;  %1715 = vmatprep.mubr.bf16.mxu0 %v3430_v3  ;;  %v1925_v39 = vld [vmem:[%s4366_s8 + $0x350] sm:$0xff] }
 0x282   : > { %3184 = vmatmul.mubr.msk.bf16.vlgmr.msra.gmra.mxu1 %vm539_vm2, %v3798_v38  ;;  %1693 = vmatprep.subr.bf16.mxu0 %v3160_v43  ;;  %v1918_v43 = vld [vmem:[%s4366_s8 + $0x318] sm:$0xff]  ;;  %v3224_v46 = vcombine.high %v1917_v37, %v1925_v39  ;;  %v3223_v44 = vcombine.low %v1917_v37, %v1925_v39 }
 0x283   : > { %1733 = vmatpush1.bf16.msra.mxu1 %v3177_v45  ;;  %1756 = vmatprep.mubr.bf16.mxu1 %v3430_v3  ;;  %v1926_v45 = vld [vmem:[%s4366_s8 + $0x358] sm:$0xff] }
 0x284   : > { %1734 = vmatprep.subr.bf16.mxu1 %v3162_v47  ;;  %v3241_v47 = vcombine.low %v1934_v33, %v1942_v34  ;;  %v3226_v50 = vcombine.high %v1918_v43, %v1926_v45  ;;  %v3225_v54 = vcombine.low %v1918_v43, %v1926_v45 }
 0x285   : > { %1694 = vmatpush1.bf16.msra.mxu0 %v3159_v48  ;;  %v1901_v48 = vld [vmem:[%s4366_s8 + $0x290] sm:$0xff] }
 0x286   : > { %1695 = vmatprep.subr.bf16.mxu0 %v3144_v51  ;;  %v1902_v51 = vld [vmem:[%s4366_s8 + $0x298] sm:$0xff]  ;;  %v3208_v53 = vcombine.high %v1901_v48, %v1909_v49  ;;  %v3207_v58 = vcombine.low %v1901_v48, %v1909_v49 }
 0x287   : > { %1735 = vmatpush1.bf16.msra.mxu1 %v3161_v52  ;;  %v1910_v52 = vld [vmem:[%s4366_s8 + $0x2d8] sm:$0xff] }
 0x288   : > { %1736 = vmatprep.subr.bf16.mxu1 %v3146_v55  ;;  %v1885_v55 = vld [vmem:[%s4366_s8 + $0x210] sm:$0xff]  ;;  %v3210_v57 = vcombine.high %v1902_v51, %v1910_v52  ;;  %v3209_v62 = vcombine.low %v1902_v51, %v1910_v52 }
 0x289   : > { %1696 = vmatpush1.bf16.msra.mxu0 %v3143_v56  ;;  %v1893_v56 = vld [vmem:[%s4366_s8 + $0x250] sm:$0xff] }
 0x28a   : > { %1697 = vmatprep.subr.bf16.mxu0 %v3128_v59  ;;  %v1886_v59 = vld [vmem:[%s4366_s8 + $0x218] sm:$0xff]  ;;  %v3192_v61 = vcombine.high %v1885_v55, %v1893_v56  ;;  %v3191_v2 = vcombine.low %v1885_v55, %v1893_v56 }
 0x28b   : > { %1737 = vmatpush1.bf16.msra.mxu1 %v3145_v60  ;;  %v1894_v60 = vld [vmem:[%s4366_s8 + $0x258] sm:$0xff] }
 0x28c   : > { %1738 = vmatprep.subr.bf16.mxu1 %v3130_v63  ;;  %v1935_v63 = vld [vmem:[%s4366_s8 + $0x3a0] sm:$0xff]  ;;  %v3194_v1 = vcombine.high %v1886_v59, %v1894_v60  ;;  %v3193_v7 = vcombine.low %v1886_v59, %v1894_v60 }
 0x28d   : > { %1698 = vmatpush1.bf16.msra.mxu0 %v3127_v0  ;;  %v1943_v0 = vld [vmem:[%s4366_s8 + $0x3e0] sm:$0xff] }
 0x28e   : > { %2279 = vmatprep.subr.bf16.mxu0 %v3236_v4  ;;  %v1936_v4 = vld [vmem:[%s4366_s8 + $0x3a8] sm:$0xff]  ;;  %v3244_v6 = vcombine.high %v1935_v63, %v1943_v0  ;;  %v3243_v11 = vcombine.low %v1935_v63, %v1943_v0 }
 0x28f   : > { %1739 = vmatpush1.bf16.msra.mxu1 %v3129_v5  ;;  %v1944_v5 = vld [vmem:[%s4366_s8 + $0x3e8] sm:$0xff] }
 0x290   : > { %3185 = vmatmul.mubr.msk.bf16.vlgmr.msra.gmra.mxu0 %vm539_vm2, %v3798_v38  ;;  %2320 = vmatprep.subr.bf16.mxu1 %v3238_v8  ;;  %v1919_v8 = vld [vmem:[%s4366_s8 + $0x320] sm:$0xff]  ;;  %v3246_v10 = vcombine.high %v1936_v4, %v1944_v5  ;;  %v3245_v15 = vcombine.low %v1936_v4, %v1944_v5  ;;  %v3431_v4 = vmov 1966171168  }
 0x291   : > { %2280 = vmatpush1.bf16.msra.mxu0 %v3235_v9  ;;  %2303 = vmatprep.mubr.bf16.mxu0 %v3430_v3  ;;  %v1927_v9 = vld [vmem:[%s4366_s8 + $0x360] sm:$0xff]  ;;  %v669_v5 = vunpack.c.l.s4 %v3431_v4 }
 0x292   : > { %3186 = vmatmul.mubr.msk.bf16.vlgmr.msra.gmra.mxu1 %vm539_vm2, %v3798_v38  ;;  %2281 = vmatprep.subr.bf16.mxu0 %v3220_v12  ;;  %v1884_v38 = vld [vmem:[%s4366_s8 + $0x208] sm:$0xff]  ;;  %v3228_v14 = vcombine.high %v1919_v8, %v1927_v9  ;;  %v3227_v19 = vcombine.low %v1919_v8, %v1927_v9 }
 0x293   : > { %2321 = vmatpush1.bf16.msra.mxu1 %v3237_v13  ;;  %2344 = vmatprep.mubr.bf16.mxu1 %v3430_v3  ;;  %v3190_v31 = vcombine.high %v1884_v38, %v1892_v26  ;;  %v3189_v36 = vcombine.low %v1884_v38, %v1892_v26  ;;  %v1920_v12 = vld [vmem:[%s4366_s8 + $0x328] sm:$0xff] }
 0x294   : > { %2322 = vmatprep.subr.bf16.mxu1 %v3222_v16  ;;  %v1928_v13 = vld [vmem:[%s4366_s8 + $0x368] sm:$0xff]  ;;  %v1903_v16 = vld [vmem:[%s4366_s8 + $0x2a0] sm:$0xff] }
 0x295   : > { %2282 = vmatpush1.bf16.msra.mxu0 %v3219_v17  ;;  %v1911_v17 = vld [vmem:[%s4366_s8 + $0x2e0] sm:$0xff]  ;;  %v3230_v18 = vcombine.high %v1920_v12, %v1928_v13  ;;  %v3229_v23 = vcombine.low %v1920_v12, %v1928_v13 }
 0x296   : > { %2283 = vmatprep.subr.bf16.mxu0 %v3204_v20  ;;  %v1904_v20 = vld [vmem:[%s4366_s8 + $0x2a8] sm:$0xff]  ;;  %v3212_v22 = vcombine.high %v1903_v16, %v1911_v17  ;;  %v3211_v26 = vcombine.low %v1903_v16, %v1911_v17 }
 0x297   : > { %2323 = vmatpush1.bf16.msra.mxu1 %v3221_v21  ;;  %v1912_v21 = vld [vmem:[%s4366_s8 + $0x2e8] sm:$0xff] }
 0x298   : > { %2324 = vmatprep.subr.bf16.mxu1 %v3206_v24  ;;  %v1887_v24 = vld [vmem:[%s4366_s8 + $0x220] sm:$0xff]  ;;  %v3214_v38 = vcombine.high %v1904_v20, %v1912_v21  ;;  %v3213_v30 = vcombine.low %v1904_v20, %v1912_v21 }
 0x299   : > { %2284 = vmatpush1.bf16.msra.mxu0 %v3203_v25  ;;  %v1895_v25 = vld [vmem:[%s4366_s8 + $0x260] sm:$0xff] }
 0x29a   : > { %2285 = vmatprep.subr.bf16.mxu0 %v3188_v27  ;;  %v1888_v27 = vld [vmem:[%s4366_s8 + $0x228] sm:$0xff]  ;;  %v3196_v29 = vcombine.high %v1887_v24, %v1895_v25  ;;  %v3195_v34 = vcombine.low %v1887_v24, %v1895_v25 }
 0x29b   : > { %2325 = vmatpush1.bf16.msra.mxu1 %v3205_v28  ;;  %v1896_v28 = vld [vmem:[%s4366_s8 + $0x268] sm:$0xff] }
 0x29c   : > { %2326 = vmatprep.subr.bf16.mxu1 %v3190_v31  ;;  %v1937_v31 = vld [vmem:[%s4366_s8 + $0x3b0] sm:$0xff]  ;;  %v3198_v33 = vcombine.high %v1888_v27, %v1896_v28  ;;  %v3197_v39 = vcombine.low %v1888_v27, %v1896_v28 }
 0x29d   : > { %2286 = vmatpush1.bf16.msra.mxu0 %v3187_v32  ;;  %v1945_v32 = vld [vmem:[%s4366_s8 + $0x3f0] sm:$0xff] }
 0x29e   : > { %2361 = vmatprep.subr.bf16.mxu0 %v3240_v35  ;;  %v1938_v35 = vld [vmem:[%s4366_s8 + $0x3b8] sm:$0xff]  ;;  %v3248_v37 = vcombine.high %v1937_v31, %v1945_v32  ;;  %v3247_v45 = vcombine.low %v1937_v31, %v1945_v32 }
 0x29f   : > { %2327 = vmatpush1.bf16.msra.mxu1 %v3189_v36  ;;  %v1946_v36 = vld [vmem:[%s4366_s8 + $0x3f8] sm:$0xff] }
 0x2a0   : > { %3251 = vmatmul.mubr.msk.bf16.vlgmr.msra.gmra.mxu0 %vm539_vm2, %v4017_v41  ;;  %2402 = vmatprep.subr.bf16.mxu1 %v3242_v40  ;;  %v1921_v40 = vld [vmem:[%s4366_s8 + $0x330] sm:$0xff]  ;;  %v3250_v43 = vcombine.high %v1938_v35, %v1946_v36  ;;  %v3249_v49 = vcombine.low %v1938_v35, %v1946_v36 }
 0x2a1   : > { %2362 = vmatpush1.bf16.msra.mxu0 %v3239_v42  ;;  %2385 = vmatprep.mubr.bf16.mxu0 %v3430_v3  ;;  %v1929_v42 = vld [vmem:[%s4366_s8 + $0x370] sm:$0xff] }
 0x2a2   : > { %3252 = vmatmul.mubr.msk.bf16.vlgmr.msra.gmra.mxu1 %vm539_vm2, %v4017_v41  ;;  %2363 = vmatprep.subr.bf16.mxu0 %v3224_v46  ;;  %v1922_v46 = vld [vmem:[%s4366_s8 + $0x338] sm:$0xff]  ;;  %v3232_v48 = vcombine.high %v1921_v40, %v1929_v42  ;;  %v3231_v52 = vcombine.low %v1921_v40, %v1929_v42 }
 0x2a3   : > { %2403 = vmatpush1.bf16.msra.mxu1 %v3241_v47  ;;  %2426 = vmatprep.mubr.bf16.mxu1 %v3430_v3  ;;  %v1930_v47 = vld [vmem:[%s4366_s8 + $0x378] sm:$0xff] }
 0x2a4   : > { %2404 = vmatprep.subr.bf16.mxu1 %v3226_v50  ;;  %v1905_v50 = vld [vmem:[%s4366_s8 + $0x2b0] sm:$0xff]  ;;  %v3234_v51 = vcombine.high %v1922_v46, %v1930_v47  ;;  %v3233_v56 = vcombine.low %v1922_v46, %v1930_v47 }
 0x2a5   : > { %2364 = vmatpush1.bf16.msra.mxu0 %v3223_v44  ;;  %v1913_v44 = vld [vmem:[%s4366_s8 + $0x2f0] sm:$0xff] }
 0x2a6   : > { %2365 = vmatprep.subr.bf16.mxu0 %v3208_v53  ;;  %v1906_v53 = vld [vmem:[%s4366_s8 + $0x2b8] sm:$0xff]  ;;  %v3216_v55 = vcombine.high %v1905_v50, %v1913_v44  ;;  %v3215_v60 = vcombine.low %v1905_v50, %v1913_v44 }
 0x2a7   : > { %2405 = vmatpush1.bf16.msra.mxu1 %v3225_v54  ;;  %v1914_v54 = vld [vmem:[%s4366_s8 + $0x2f8] sm:$0xff] }
 0x2a8   : > { %2406 = vmatprep.subr.bf16.mxu1 %v3210_v57  ;;  %v1889_v57 = vld [vmem:[%s4366_s8 + $0x230] sm:$0xff]  ;;  %v3218_v59 = vcombine.high %v1906_v53, %v1914_v54  ;;  %v3217_v0 = vcombine.low %v1906_v53, %v1914_v54 }
 0x2a9   : > { %2366 = vmatpush1.bf16.msra.mxu0 %v3207_v58  ;;  %v1897_v58 = vld [vmem:[%s4366_s8 + $0x270] sm:$0xff] }
 0x2aa   : > { %2367 = vmatprep.subr.bf16.mxu0 %v3192_v61  ;;  %v1890_v61 = vld [vmem:[%s4366_s8 + $0x238] sm:$0xff]  ;;  %v3200_v63 = vcombine.high %v1889_v57, %v1897_v58 }
 0x2ab   : > { %2407 = vmatpush1.bf16.msra.mxu1 %v3209_v62  ;;  %v1898_v62 = vld [vmem:[%s4366_s8 + $0x278] sm:$0xff] }
 0x2ac   : > { %2408 = vmatprep.subr.bf16.mxu1 %v3194_v1  ;;  %v3202_v1 = vcombine.high %v1890_v61, %v1898_v62 }
 0x2ad   : > { %2368 = vmatpush1.bf16.msra.mxu0 %v3191_v2  ;;  %v3201_v2 = vcombine.low %v1890_v61, %v1898_v62 }
 0x2ae   : > { %2443 = vmatprep.subr.bf16.mxu0 %v3244_v6  ;;  %v671_v6 = vlaneseq }
 0x2af   : > { %2409 = vmatpush1.bf16.msra.mxu1 %v3193_v7  ;;  %v670_v7 = vunpack.c.0.s8 %v669_v5 }
 0x2b0   : > { %3253 = vmatmul.mubr.msk.bf16.vlgmr.msra.gmra.mxu0 %vm539_vm2, %v4017_v41  ;;  %2484 = vmatprep.subr.bf16.mxu1 %v3246_v10  ;;  %v4161_v8 = vshrl.u32 %v671_v6, 7 }
 0x2b1   : > { %2444 = vmatpush1.bf16.msra.mxu0 %v3243_v11  ;;  %2467 = vmatprep.mubr.bf16.mxu0 %v3430_v3 }
 0x2b2   : > { %3254 = vmatmul.mubr.msk.bf16.vlgmr.msra.gmra.mxu1 %vm539_vm2, %v4017_v41  ;;  %2445 = vmatprep.subr.bf16.mxu0 %v3228_v14  ;;  %v4164_v10 = vsub.s32 %v670_v7, %v4161_v8 }
 0x2b3   : > { %2485 = vmatpush1.bf16.msra.mxu1 %v3245_v15  ;;  %2508 = vmatprep.mubr.bf16.mxu1 %v3430_v3 }
 0x2b4   : > { %2486 = vmatprep.subr.bf16.mxu1 %v3230_v18 }
 0x2b5   : > { %2446 = vmatpush1.bf16.msra.mxu0 %v3227_v19 }
 0x2b6   : > { %2447 = vmatprep.subr.bf16.mxu0 %v3212_v22 }
 0x2b7   : > { %2487 = vmatpush1.bf16.msra.mxu1 %v3229_v23 }
 0x2b8   : > { %2488 = vmatprep.subr.bf16.mxu1 %v3214_v38 }
 0x2b9   : > { %2448 = vmatpush1.bf16.msra.mxu0 %v3211_v26 }
 0x2ba   : > { %2449 = vmatprep.subr.bf16.mxu0 %v3196_v29 }
 0x2bb   : > { %2489 = vmatpush1.bf16.msra.mxu1 %v3213_v30 }
 0x2bc   : > { %2490 = vmatprep.subr.bf16.mxu1 %v3198_v33 }
 0x2bd   : > { %2450 = vmatpush1.bf16.msra.mxu0 %v3195_v34 }
 0x2be   : > { %2525 = vmatprep.subr.bf16.mxu0 %v3248_v37 }
 0x2bf   : > { %2491 = vmatpush1.bf16.msra.mxu1 %v3197_v39 }
 0x2c0   : > { %3255 = vmatmul.mubr.msk.bf16.vlgmr.msra.gmra.mxu0 %vm539_vm2, %v4017_v41  ;;  %2566 = vmatprep.subr.bf16.mxu1 %v3250_v43 }
 0x2c1   : > { %2526 = vmatpush1.bf16.msra.mxu0 %v3247_v45  ;;  %2549 = vmatprep.mubr.bf16.mxu0 %v3430_v3 }
 0x2c2   : > { %3256 = vmatmul.mubr.msk.bf16.vlgmr.msra.gmra.mxu1 %vm539_vm2, %v4017_v41  ;;  %2527 = vmatprep.subr.bf16.mxu0 %v3232_v48 }
 0x2c3   : > { %2567 = vmatpush1.bf16.msra.mxu1 %v3249_v49  ;;  %2590 = vmatprep.mubr.bf16.mxu1 %v3430_v3  ;;  %v3199_v3 = vcombine.low %v1889_v57, %v1897_v58 }
 0x2c4   : > { %2568 = vmatprep.subr.bf16.mxu1 %v3234_v51 }
 0x2c5   : > { %2528 = vmatpush1.bf16.msra.mxu0 %v3231_v52 }
 0x2c6   : > { %2529 = vmatprep.subr.bf16.mxu0 %v3216_v55 }
 0x2c7   : > { %2569 = vmatpush1.bf16.msra.mxu1 %v3233_v56 }
 0x2c8   : > { %2570 = vmatprep.subr.bf16.mxu1 %v3218_v59 }
 0x2c9   : > { %2530 = vmatpush1.bf16.msra.mxu0 %v3215_v60 }
 0x2ca   : > { %2531 = vmatprep.subr.bf16.mxu0 %v3200_v63 }
 0x2cb   : > { %2571 = vmatpush1.bf16.msra.mxu1 %v3217_v0 }
 0x2cc   : > { %2572 = vmatprep.subr.bf16.mxu1 %v3202_v1 }
 0x2cd   : > { %2532 = vmatpush1.bf16.msra.mxu0 %v3199_v3 }
 0x2cf   : > { %2573 = vmatpush1.bf16.msra.mxu1 %v3201_v2 }
 0x2d0   : > { %3257 = vmatmul.mubr.msk.bf16.vlgmr.msra.gmra.mxu0 %vm539_vm2, %v4017_v41 }
 0x2d2   : > { %3258 = vmatmul.mubr.msk.bf16.vlgmr.msra.gmra.mxu1 %vm539_vm2, %v4017_v41  ;;  %v571_v41 = vld [vmem:[%s4363_s5] sm:$0x3] }
 0x300   : > { %v658_v9 = vpop.f32.mrf.mxu0 }
 0x302   : > { %v660_v11 = vpop.f32.mrf.mxu0  ;;  %v771_v12 = vpop.f32.mrf.mxu1 }
 0x303   : > { %v667_v13 = vcombine.low %v658_v9, %v660_v11 }
 0x304   : > { %v662_v14 = vpop.f32.mrf.mxu0  ;;  %v773_v15 = vpop.f32.mrf.mxu1 }
 0x305   : > { %v674_v16 = vrot.slane %v667_v13, %v4164_v10  ;;  %v780_v17 = vcombine.low %v771_v12, %v773_v15 }
 0x306   : > { %v663_v18 = vpop.f32.mrf.mxu0  ;;  %v775_v19 = vpop.f32.mrf.mxu1 }
 0x307   : > { %v681_v20 = vrot.slane %v674_v16, %v4164_v10  ;;  %v787_v21 = vrot.slane %v780_v17, %v4164_v10 }
 0x308   : > { %v776_v22 = vpop.f32.mrf.mxu1 }
 0x309   : > { %v683_v23 = vadd.f32 %v681_v20, %v571_v41  ;;  %v794_v24 = vrot.slane %v787_v21, %v4164_v10 }
 0x30b   : > { %v796_v25 = vadd.f32 %v794_v24, %v683_v23 }
 0x310   : > { %v884_v38 = vpop.f32.mrf.mxu0 }
 0x312   : > { %v886_v26 = vpop.f32.mrf.mxu0  ;;  %v996_v27 = vpop.f32.mrf.mxu1 }
 0x313   : > { %v893_v28 = vcombine.low %v884_v38, %v886_v26 }
 0x314   : > { %v888_v29 = vpop.f32.mrf.mxu0  ;;  %v998_v30 = vpop.f32.mrf.mxu1 }
 0x315   : > { %v900_v31 = vrot.slane %v893_v28, %v4164_v10  ;;  %v1005_v32 = vcombine.low %v996_v27, %v998_v30 }
 0x316   : > { %v889_v33 = vpop.f32.mrf.mxu0  ;;  %v1000_v34 = vpop.f32.mrf.mxu1 }
 0x317   : > { %v907_v35 = vrot.slane %v900_v31, %v4164_v10  ;;  %v1012_v36 = vrot.slane %v1005_v32, %v4164_v10 }
 0x318   : > { %v1001_v37 = vpop.f32.mrf.mxu1 }
 0x319   : > { %v909_v39 = vadd.f32 %v907_v35, %v796_v25  ;;  %v1019_v40 = vrot.slane %v1012_v36, %v4164_v10 }
 0x31b   : > { %v4177_v42 = vadd.f32 %v1019_v40, %v909_v39 }
 0x320   : > { %v1471_v43 = vpop.f32.mrf.mxu0 }
 0x322   : > { %v1473_v45 = vpop.f32.mrf.mxu0  ;;  %v1512_v46 = vpop.f32.mrf.mxu1 }
 0x323   : > { %v1781_v47 = vcombine.low %v1471_v43, %v1473_v45 }
 0x324   : > { %v1475_v48 = vpop.f32.mrf.mxu0  ;;  %v1514_v49 = vpop.f32.mrf.mxu1 }
 0x325   : > { %v1782_v50 = vcombine.low %v1512_v46, %v1514_v49  ;;  %v1791_v52 = vrot.slane %v1781_v47, %v4164_v10 }
 0x326   : > { %v1476_v44 = vpop.f32.mrf.mxu0  ;;  %v1516_v51 = vpop.f32.mrf.mxu1 }
 0x327   : > { %v1798_v53 = vrot.slane %v1782_v50, %v4164_v10 }
 0x328   : > { %v1517_v54 = vpop.f32.mrf.mxu1 }
 0x329   : > { %v1813_v55 = vcombine.low %v1791_v52, %v1798_v53 }
 0x32b   : > { %v4184_v5 = vrot.slane %v1813_v55, %v4164_v10 }
 0x330   : > { %v1553_v56 = vpop.f32.mrf.mxu0 }
 0x332   : > { %v1555_v57 = vpop.f32.mrf.mxu0  ;;  %v1594_v58 = vpop.f32.mrf.mxu1 }
 0x333   : > { %v1783_v59 = vcombine.low %v1553_v56, %v1555_v57 }
 0x334   : > { %v1557_v60 = vpop.f32.mrf.mxu0  ;;  %v1596_v61 = vpop.f32.mrf.mxu1 }
 0x335   : > { %v1784_v62 = vcombine.low %v1594_v58, %v1596_v61  ;;  %v1805_v1 = vrot.slane %v1783_v59, %v4164_v10 }
 0x336   : > { %v1558_v63 = vpop.f32.mrf.mxu0  ;;  %v1598_v0 = vpop.f32.mrf.mxu1 }
 0x337   : > { %v1812_v3 = vrot.slane %v1784_v62, %v4164_v10 }
 0x338   : > { %v1599_v2 = vpop.f32.mrf.mxu1 }
 0x339   : > { %v1814_v4 = vcombine.low %v1805_v1, %v1812_v3 }
 0x33b   : > { %v4187_v6 = vrot.slane %v1814_v4, %v4164_v10 }
 0x33d   : > { %v1829_v7 = vcombine.low %v4184_v5, %v4187_v6  ;;  %v4228_v5 = vsub.s32 4, %v4161_v8  ;;  %v4231_v6 = vsub.s32 5, %v4161_v8 }
 0x340   : > { %v1635_v9 = vpop.f32.mrf.mxu0 }
 0x342   : > { %v1637_v11 = vpop.f32.mrf.mxu0  ;;  %v1676_v12 = vpop.f32.mrf.mxu1 }
 0x343   : > { %v1830_v13 = vcombine.low %v1635_v9, %v1637_v11 }
 0x344   : > { %v1639_v14 = vpop.f32.mrf.mxu0  ;;  %v1678_v15 = vpop.f32.mrf.mxu1 }
 0x345   : > { %v1831_v16 = vcombine.low %v1676_v12, %v1678_v15  ;;  %v1840_v18 = vrot.slane %v1830_v13, %v4164_v10 }
 0x346   : > { %v1640_v17 = vpop.f32.mrf.mxu0  ;;  %v1680_v41 = vpop.f32.mrf.mxu1 }
 0x347   : > { %v1847_v19 = vrot.slane %v1831_v16, %v4164_v10  ;;  %v1047_v17 = vld [vmem:[%s4367_s9] sm:$0xff] }
 0x348   : > { %v1681_v20 = vpop.f32.mrf.mxu1 }
 0x349   : > { %v1862_v21 = vcombine.low %v1840_v18, %v1847_v19  ;;  %v1881_v20 = vadd.f32 %v1829_v7, %v1047_v17 }
 0x34b   : > { %v4196_v34 = vrot.slane %v1862_v21, %v4164_v10 }
 0x350   : > { %v1717_v22 = vpop.f32.mrf.mxu0 }
 0x352   : > { %v1719_v23 = vpop.f32.mrf.mxu0  ;;  %v1758_v24 = vpop.f32.mrf.mxu1 }
 0x353   : > { %v1832_v25 = vcombine.low %v1717_v22, %v1719_v23 }
 0x354   : > { %v1721_v38 = vpop.f32.mrf.mxu0  ;;  %v1760_v26 = vpop.f32.mrf.mxu1 }
 0x355   : > { %v1833_v27 = vcombine.low %v1758_v24, %v1760_v26  ;;  %v1854_v30 = vrot.slane %v1832_v25, %v4164_v10  ;;  %v4219_v26 = vsub.s32 0, %v4161_v8 }
 0x356   : > { %v1722_v28 = vpop.f32.mrf.mxu0  ;;  %v1762_v29 = vpop.f32.mrf.mxu1 }
 0x357   : > { %v1861_v31 = vrot.slane %v1833_v27, %v4164_v10  ;;  %v4222_v29 = vsub.s32 2, %v4161_v8 }
 0x358   : > { %v1763_v32 = vpop.f32.mrf.mxu1 }
 0x359   : > { %v1863_v33 = vcombine.low %v1854_v30, %v1861_v31  ;;  %v4225_v30 = vsub.s32 3, %v4161_v8  ;;  %v4235_v32 = vsub.s32 6, %v4161_v8 }
 0x35b   : > { %v4199_v35 = vrot.slane %v1863_v33, %v4164_v10  ;;  %v4238_v33 = vsub.s32 7, %v4161_v8 }
 0x35d   : > { %v1878_v36 = vcombine.low %v4196_v34, %v4199_v35 }
 0x360   : > { %v2305_v37 = vpop.f32.mrf.mxu0 }
 0x362   : > { %v2307_v39 = vpop.f32.mrf.mxu0  ;;  %v2346_v40 = vpop.f32.mrf.mxu1 }
 0x363   : > { %v2615_v62 = vcombine.low %v2305_v37, %v2307_v39 }
 0x364   : > { %v2309_v43 = vpop.f32.mrf.mxu0  ;;  %v2348_v45 = vpop.f32.mrf.mxu1 }
 0x365   : > { %v2616_v58 = vcombine.low %v2346_v40, %v2348_v45  ;;  %v2625_v11 = vrot.slane %v2615_v62, %v4164_v10  ;;  %v4241_v40 = vsub.s32 1, %v4161_v8 }
 0x366   : > { %v2310_v46 = vpop.f32.mrf.mxu0  ;;  %v2350_v47 = vpop.f32.mrf.mxu1 }
 0x367   : > { %v2632_v3 = vrot.slane %v2616_v58, %v4164_v10 }
 0x368   : > { %v2351_v48 = vpop.f32.mrf.mxu1 }
 0x369   : > { %v2647_v14 = vcombine.low %v2625_v11, %v2632_v3  ;;  %v1048_v48 = vld [vmem:[%s4367_s9 + $0x8] sm:$0xff] }
 0x36b   : > { %v2655_v16 = vrot.slane %v2647_v14, %v4164_v10 }
 0x370   : > { %v2387_v49 = vpop.f32.mrf.mxu0 }
 0x372   : > { %v2389_v50 = vpop.f32.mrf.mxu0  ;;  %v2428_v44 = vpop.f32.mrf.mxu1 }
 0x373   : > { %v2617_v59 = vcombine.low %v2387_v49, %v2389_v50 }
 0x374   : > { %v2391_v51 = vpop.f32.mrf.mxu0  ;;  %v2430_v52 = vpop.f32.mrf.mxu1 }
 0x375   : > { %v2618_v56 = vcombine.low %v2428_v44, %v2430_v52  ;;  %v2639_v2 = vrot.slane %v2617_v59, %v4164_v10 }
 0x376   : > { %v2392_v53 = vpop.f32.mrf.mxu0  ;;  %v2432_v54 = vpop.f32.mrf.mxu1 }
 0x377   : > { %v2646_v63 = vrot.slane %v2618_v56, %v4164_v10  ;;  %v1022_v56 = vmax.f32 %v4177_v42, 0.0  ;;  %v1023_v42 = vld [vmem:[%s4364_s6] sm:$0x3] }
 0x378   : > { %v2433_v55 = vpop.f32.mrf.mxu1 }
 0x379   : > { %v2648_v12 = vcombine.low %v2639_v2, %v2646_v63  ;;  %v1024_v3 = vmul.f32 %v1023_v42, %v1022_v56 }
 0x37b   : > { %v2662_v15 = vrot.slane %v2648_v12, %v4164_v10 }
 0x37d   : > { %v2663_v41 = vcombine.low %v2655_v16, %v2662_v15 }
 0x37f   : > { %v4215_v24 = vadd.f32 %v2663_v41, %v1881_v20 }
 0x380   : > { %v2469_v57 = vpop.f32.mrf.mxu0 }
 0x381   : > { %v2722_v47 = vrot.slane %v4215_v24, %v4219_v26  ;;  %v2726_v50 = vrot.slane %v4215_v24, %v4241_v40  ;;  %v2730_v8 = vrot.slane %v4215_v24, %v4222_v29  ;;  %v2734_v44 = vrot.slane %v4215_v24, %v4225_v30 }
 0x382   : > { %v2471_v60 = vpop.f32.mrf.mxu0  ;;  %v2510_v61 = vpop.f32.mrf.mxu1  ;;  %v2738_v51 = vrot.slane %v4215_v24, %v4228_v5  ;;  %v2742_v53 = vrot.slane %v4215_v24, %v4231_v6  ;;  %v2746_v54 = vrot.slane %v4215_v24, %v4235_v32  ;;  %v2750_v55 = vrot.slane %v4215_v24, %v4238_v33 }
 0x383   : > { %v2664_v21 = vcombine.low %v2469_v57, %v2471_v60  ;;  %v1882_v57 = vadd.f32 %v1878_v36, %v1048_v48  ;;  %v2799_v60 = vsel %vm1036_vm3, %v2722_v47, -inf  ;;  %v2801_v62 = vsel %vm1036_vm3, %v2730_v8, -inf }
 0x384   : > { %v2473_v0 = vpop.f32.mrf.mxu0  ;;  %v2512_v1 = vpop.f32.mrf.mxu1  ;;  %v2802_v63 = vsel %vm1036_vm3, %v2734_v44, -inf  ;;  %v2805_v35 = vsel %vm1036_vm3, %v2742_v53, -inf  ;;  %v2807_v36 = vsel %vm1036_vm3, %v2746_v54, -inf  ;;  %v1029_v47 = vrot.slane %v1024_v3, %v4219_v26 }
 0x385   : > { %v2665_v18 = vcombine.low %v2510_v61, %v2512_v1  ;;  %v2674_v7 = vrot.slane %v2664_v21, %v4164_v10  ;;  %v2800_v61 = vsel %vm1036_vm3, %v2726_v50, -inf  ;;  %v2803_v0 = vsel %vm1036_vm3, %v2738_v51, -inf }
 0x386   : > { %v2474_v4 = vpop.f32.mrf.mxu0  ;;  %v2514_v9 = vpop.f32.mrf.mxu1  ;;  %v2804_v2 = vmax.f32 %v2799_v60, %v2803_v0  ;;  %v1033_v48 = vrot.slane %v1024_v3, %v4241_v40  ;;  %v1037_v44 = vsel %vm1036_vm3, %v1029_v47, 0.0 }
 0x387   : > { %v2681_v25 = vrot.slane %v2665_v18, %v4164_v10  ;;  %v2806_v4 = vmax.f32 %v2800_v61, %v2805_v35  ;;  %v2808_v9 = vmax.f32 %v2801_v62, %v2807_v36 }
 0x388   : > { %v2515_v13 = vpop.f32.mrf.mxu1  ;;  %v1038_v51 = vsel %vm1036_vm3, %v1033_v48, 0.0 }
 0x389   : > { %v2696_v43 = vcombine.low %v2674_v7, %v2681_v25 }
 0x38b   : > { %v2704_v58 = vrot.slane %v2696_v43, %v4164_v10 }
 0x390   : > { %v2551_v19 = vpop.f32.mrf.mxu0 }
 0x392   : > { %v2553_v22 = vpop.f32.mrf.mxu0  ;;  %v2592_v23 = vpop.f32.mrf.mxu1 }
 0x393   : > { %v2666_v38 = vcombine.low %v2551_v19, %v2553_v22 }
 0x394   : > { %v2555_v27 = vpop.f32.mrf.mxu0  ;;  %v2594_v28 = vpop.f32.mrf.mxu1 }
 0x395   : > { %v2667_v31 = vcombine.low %v2592_v23, %v2594_v28  ;;  %v2688_v45 = vrot.slane %v2666_v38, %v4164_v10 }
 0x396   : > { %v2556_v37 = vpop.f32.mrf.mxu0  ;;  %v2596_v39 = vpop.f32.mrf.mxu1 }
 0x397   : > { %v2695_v46 = vrot.slane %v2667_v31, %v4164_v10 }
 0x398   : > { %v2597_v49 = vpop.f32.mrf.mxu1 }
 0x399   : > { %v2697_v52 = vcombine.low %v2688_v45, %v2695_v46 }
 0x39b   : > { %v2711_v59 = vrot.slane %v2697_v52, %v4164_v10  ;;  %v2809_v10 = vsel %vm1036_vm3, %v2750_v55, -inf  ;;  %v1039_v52 = vadd.f32 %v1038_v51, %v1037_v44  ;;  %v1042_v55 = vld [vmem:[#allocation4] sm:$0x1] }
 0x39c   : > { %v2810_v11 = vmax.f32 %v2802_v63, %v2809_v10 }
 0x39d   : > { %v2712_v34 = vcombine.low %v2704_v58, %v2711_v59 }
 0x39f   : > { %v2716_v1 = vadd.f32 %v2712_v34, %v1882_v57 }
 0x3a1   : > { %v2754_v12 = vrot.slane %v2716_v1, %v4219_v26  ;;  %v2758_v13 = vrot.slane %v2716_v1, %v4241_v40  ;;  %v2762_v14 = vrot.slane %v2716_v1, %v4222_v29  ;;  %v2766_v15 = vrot.slane %v2716_v1, %v4225_v30 }
 0x3a2   : > { %v2770_v16 = vrot.slane %v2716_v1, %v4228_v5  ;;  %v2774_v17 = vrot.slane %v2716_v1, %v4231_v6  ;;  %v2778_v41 = vrot.slane %v2716_v1, %v4235_v32  ;;  %v2782_v18 = vrot.slane %v2716_v1, %v4238_v33 }
 0x3a3   : > { %v2811_v19 = vsel %vm1036_vm3, %v2754_v12, -inf  ;;  %v2813_v20 = vsel %vm1036_vm3, %v2758_v13, -inf  ;;  %v2815_v21 = vsel %vm1036_vm3, %v2762_v14, -inf  ;;  %v2817_v22 = vsel %vm1036_vm3, %v2766_v15, -inf }
 0x3a4   : > { %v2812_v23 = vmax.f32 %v2804_v2, %v2811_v19  ;;  %v2814_v25 = vmax.f32 %v2806_v4, %v2813_v20  ;;  %v2816_v38 = vmax.f32 %v2808_v9, %v2815_v21  ;;  %v2818_v27 = vmax.f32 %v2810_v11, %v2817_v22 }
 0x3a5   : > { %v2819_v28 = vsel %vm1036_vm3, %v2770_v16, -inf  ;;  %v2821_v7 = vsel %vm1036_vm3, %v2774_v17, -inf  ;;  %v2823_v31 = vsel %vm1036_vm3, %v2778_v41, -inf  ;;  %v2825_v37 = vsel %vm1036_vm3, %v2782_v18, -inf }
 0x3a6   : > { %v2820_v39 = vmax.f32 %v2812_v23, %v2819_v28  ;;  %v2822_v43 = vmax.f32 %v2814_v25, %v2821_v7  ;;  %v2824_v45 = vmax.f32 %v2816_v38, %v2823_v31  ;;  %v2826_v46 = vmax.f32 %v2818_v27, %v2825_v37 }
 0x3a8   : > { %v2827_v49 = vmax.f32 %v2820_v39, %v2822_v43  ;;  %v2828_v50 = vmax.f32 %v2824_v45, %v2826_v46 }
 0x3aa   : > { %v2829_v8 = vmax.f32 %v2827_v49, %v2828_v50 }
 0x3ac   : > { %2830 = vmax.xlane.f32.xlu0 %v2829_v8 }
 0x3b0   : > { %1040 = vadd.xlane.f32.xlu0 %v1039_v52 }
 0x435   : > { %v2831_v53 = vpop.xlane.xlu0 %2830 }
 0x436   : > { %v2836_v54 = vrot.slane %v2831_v53, %v4219_v26 }
 0x438   : > { %v2838_v56 = vsub.f32 %v4215_v24, %v2836_v54  ;;  %v2839_v60 = vsub.f32 %v2716_v1, %v2836_v54 }
 0x439   : > { %v1041_v57 = vpop.xlane.xlu0 %1040 }
 0x43a   : > { %v2840_v58 = vmul.f32 1.442695, %v2838_v56  ;;  %v1043_v59 = vadd.f32 %v1042_v55, %v1041_v57  ;;  %v2842_v61 = vmul.f32 1.442695, %v2839_v60 }
 0x43c   : > { %3381 = vpow2.f32 %v2840_v58 }
 0x43d   : > { %3383 = vtanh.f32 %v1043_v59 }
 0x43e   : > { %3385 = vpow2.f32 %v2842_v61 }
 0x449   : > { %v3382_v62 = vpop.eup %3381 }
 0x44a   : > { %v2849_v63 = vrot.slane %v3382_v62, %v4219_v26  ;;  %v2853_v0 = vrot.slane %v3382_v62, %v4241_v40  ;;  %v3384_v42 = vpop.eup %3383  ;;  %v2857_v24 = vrot.slane %v3382_v62, %v4222_v29  ;;  %v2861_v34 = vrot.slane %v3382_v62, %v4225_v30 }
 0x44b   : > { %1046 = vst.msk [vmem:[%s416_s17] sm:$0x1] %vm1045_vm4, %v3384_v42  ;;  %v2865_v1 = vrot.slane %v3382_v62, %v4228_v5  ;;  %v2869_v4 = vrot.slane %v3382_v62, %v4231_v6  ;;  %v2873_v12 = vrot.slane %v3382_v62, %v4235_v32  ;;  %v3386_v14 = vpop.eup %3385  ;;  %v2877_v16 = vrot.slane %v3382_v62, %v4238_v33 }
 0x44c   : > { %v2926_v35 = vsel %vm1036_vm3, %v2849_v63, 0.0  ;;  %v2927_v36 = vsel %vm1036_vm3, %v2853_v0, 0.0  ;;  %v2929_v3 = vsel %vm1036_vm3, %v2857_v24, 0.0  ;;  %v2931_v9 = vsel %vm1036_vm3, %v2861_v34, 0.0 }
 0x44d   : > { %v2928_v10 = vadd.f32 %v2927_v36, %v2926_v35  ;;  %v2933_v13 = vsel %vm1036_vm3, %v2865_v1, 0.0  ;;  %v2935_v17 = vsel %vm1036_vm3, %v2869_v4, 0.0  ;;  %v2881_v18 = vrot.slane %v3386_v14, %v4219_v26 }
 0x44e   : > { %v2937_v19 = vsel %vm1036_vm3, %v2873_v12, 0.0  ;;  %v2885_v21 = vrot.slane %v3386_v14, %v4241_v40  ;;  %v2939_v22 = vsel %vm1036_vm3, %v2877_v16, 0.0  ;;  %v2889_v25 = vrot.slane %v3386_v14, %v4222_v29 }
 0x44f   : > { %v2930_v2 = vadd.f32 %v2929_v3, %v2928_v10  ;;  %v2941_v38 = vsel %vm1036_vm3, %v2881_v18, 0.0  ;;  %v2893_v28 = vrot.slane %v3386_v14, %v4225_v30  ;;  %v2897_v37 = vrot.slane %v3386_v14, %v4228_v5 }
 0x450   : > { %v2943_v7 = vsel %vm1036_vm3, %v2885_v21, 0.0  ;;  %v2945_v39 = vsel %vm1036_vm3, %v2889_v25, 0.0  ;;  %v2901_v40 = vrot.slane %v3386_v14, %v4231_v6  ;;  %v2905_v29 = vrot.slane %v3386_v14, %v4235_v32 }
 0x451   : > { %v2932_v11 = vadd.f32 %v2931_v9, %v2930_v2  ;;  %v2947_v45 = vsel %vm1036_vm3, %v2893_v28, 0.0  ;;  %v2949_v47 = vsel %vm1036_vm3, %v2897_v37, 0.0  ;;  %v2909_v30 = vrot.slane %v3386_v14, %v4238_v33 }
 0x452   : > { %v2951_v49 = vsel %vm1036_vm3, %v2901_v40, 0.0  ;;  %v2953_v50 = vsel %vm1036_vm3, %v2905_v29, 0.0 }
 0x453   : > { %v2934_v15 = vadd.f32 %v2933_v13, %v2932_v11  ;;  %v2955_v6 = vsel %vm1036_vm3, %v2909_v30, 0.0 }
 0x455   : > { %v2936_v41 = vadd.f32 %v2935_v17, %v2934_v15 }
 0x457   : > { %v2938_v20 = vadd.f32 %v2937_v19, %v2936_v41 }
 0x459   : > { %v2940_v23 = vadd.f32 %v2939_v22, %v2938_v20 }
 0x45b   : > { %v2942_v27 = vadd.f32 %v2941_v38, %v2940_v23 }
 0x45d   : > { %v2944_v31 = vadd.f32 %v2943_v7, %v2942_v27 }
 0x45f   : > { %v2946_v43 = vadd.f32 %v2945_v39, %v2944_v31 }
 0x461   : > { %v2948_v46 = vadd.f32 %v2947_v45, %v2946_v43 }
 0x463   : > { %v2950_v48 = vadd.f32 %v2949_v47, %v2948_v46 }
 0x465   : > { %v2952_v5 = vadd.f32 %v2951_v49, %v2950_v48 }
 0x467   : > { %v2954_v8 = vadd.f32 %v2953_v50, %v2952_v5 }
 0x469   : > { %v2956_v44 = vadd.f32 %v2955_v6, %v2954_v8 }
 0x46b   : > { %2957 = vadd.xlane.f32.xlu1 %v2956_v44 }
 0x4f4   : > { %v2958_v51 = vpop.xlane.xlu1 %2957 }
 0x4f5   : > { %v2963_v32 = vrot.slane %v2958_v51, %v4219_v26 }
 0x4f7   : > { %3387 = vrcp.f32 %v2963_v32 }
 0x504   : > { %v3388_v52 = vpop.eup %3387 }
 0x505   : > { %v2966_v53 = vmul.f32 %v3388_v52, %v3382_v62  ;;  %v2967_v54 = vmul.f32 %v3388_v52, %v3386_v14 }
 0x507   : > { %2968 = vst [vmem:[%s3564_s27] sm:$0xff] %v2966_v53  ;;  %2969 = vst [vmem:[%s3564_s27 + $0x8] sm:$0xff] %v2967_v54 }
 0x508 PF: > { %s24_s23 = sadd.s32 1, %s3427_s23   ;;  %s4370_s19 = smov %s3419_s21 }
 0x509   : > { %p21_p10 = scmp.ge.s32.totalorder %s24_s23, 10   ;;  %s4371_s20 = smov %s3423_s22 }
 0x50a   : > { %s4372_s21 = smov %s4375_s7  ;;  %s4373_s22 = smov %s4379_s24 }
 0x50b   :  { %23 = sbr.rel (!%p21_p10) target bundleno = 3 (0x3), region = 114 }

</bundles_post_ra>
